<compile_context>
chip_gen: v5e
topology: v5e:2x2
jax: 0.10.0
libtpu: 0.0.40
codegen_flags: <defaults>
</compile_context>

<pallas_src>
import math

import jax
import jax.numpy as jnp
from jax import lax
from jax.experimental import pallas as pl
from jax.experimental.pallas import tpu as pltpu

# ---------------- small synthetic config ----------------
B = 2
L = 8                        # t5 word-seq length
XF_WIDTH = 32                # stand-in for 1024
XF_LAYERS = 2                # stand-in for 16
XF_HEADS = 4                 # stand-in for 32
DIM_HEAD = XF_WIDTH // XF_HEADS
CLIP_WIDTH = 48              # stand-in for 512*3
T5_DIM = 32                  # stand-in for 1024
FF_MULT = 4
FF_INNER = XF_WIDTH * FF_MULT
SEQ = L + 4                  # [text(L), clip_s(1), temb(1), x(1), final_emb(1)]

# Scoped VMEM limit.  At real dims size this from one layer's bf16 weights x2
# (double-buffered for layer-(l+1) prefetch) + the resident activation slab,
# leaving headroom; 48 MiB is safely below every chip's physical VMEM.
VMEM_LIMIT = 48 * 1024 * 1024


# ---------------- glue: sinusoidal timestep embedding ----------------
def timestep_embedding(timesteps, dim, max_period=10000):
    half = dim // 2
    freqs = jnp.exp(-math.log(max_period) *
                    jnp.arange(half, dtype=jnp.float32) / half)
    args = timesteps.astype(jnp.float32)[:, None] * freqs[None, :]
    return jnp.concatenate([jnp.cos(args), jnp.sin(args)], axis=-1)


def make_attn_bias(num_seqs, seq_len):
    """Additive bias on flattened (num_seqs*seq_len)^2 logits: 0 where key is
    in the same sequence and causally visible, -1e9 otherwise."""
    idx = jnp.arange(num_seqs * seq_len, dtype=jnp.int32)
    bid = idx // seq_len
    sid = idx % seq_len
    ok = (bid[:, None] == bid[None, :]) & (sid[None, :] <= sid[:, None])
    return jnp.where(ok, 0.0, -1e9).astype(jnp.float32)


def _full_spec(a):
    nd = a.ndim
    return pl.BlockSpec(a.shape, lambda *_, _nd=nd: (0,) * _nd)


# ---------------- Pallas kernel 1: fused input-sequence builder ----------------
# Computes x_proj, clip_sentence_proj, time_embed and t5_proj in ONE call and
# writes the concatenated transformer input (B*SEQ, xf) directly.
def build_inp_kernel(x_ref, temb_ref, clip_ref, t5_ref, fin_ref,
                     xw1, xb1, xg, xw2, xb2,
                     cw1, cb1, cg, cw2, cb2,
                     tw1, tb1, tw2, tb2,
                     pg, pw1, pb1, pgm, pw2, pb2,
                     o_ref):
    def layer_norm(v, g):       # nn.LayerNorm; beta is a registered zero buffer
        mu = jnp.mean(v, axis=-1, keepdims=True)
        var = jnp.mean(jnp.square(v - mu), axis=-1, keepdims=True)
        return (v - mu) * lax.rsqrt(var + 1e-5) * g[...]

    def mm(a, w):               # bf16 MXU operands, f32 accumulation
        return jnp.dot(a.astype(jnp.bfloat16), w[...],
                       preferred_element_type=jnp.float32)

    def silu(v):
        return v * jax.nn.sigmoid(v)

    # x_proj: Linear -> SiLU -> LayerNorm -> Linear
    hx = layer_norm(silu(mm(x_ref[...], xw1) + xb1[...]), xg)
    x_out = mm(hx, xw2) + xb2[...]                              # (B, XF)
    # clip_sentence_proj: same structure
    hc = layer_norm(silu(mm(clip_ref[...], cw1) + cb1[...]), cg)
    c_out = mm(hc, cw2) + cb2[...]                              # (B, XF)
    # time_embed: Linear -> SiLU -> Linear
    t_out = mm(silu(mm(temb_ref[...], tw1) + tb1[...]), tw2) + tb2[...]
    # t5_proj: LayerNorm -> Linear -> SiLU -> LayerNorm -> Linear
    h5 = layer_norm(t5_ref[...].astype(jnp.float32), pg)
    h5 = layer_norm(silu(mm(h5, pw1) + pb1[...]), pgm)
    t5_out = mm(h5, pw2) + pb2[...]                             # (B*L, XF)

    fin = fin_ref[...]                                          # (1, XF)
    for b in range(B):   # static: rows = [text(L), clip_s, temb, x, final_emb]
        r = b * SEQ
        o_ref[r:r + L, :] = t5_out[b * L:(b + 1) * L, :].astype(o_ref.dtype)
        o_ref[r + L:r + L + 1, :] = c_out[b:b + 1, :].astype(o_ref.dtype)
        o_ref[r + L + 1:r + L + 2, :] = t_out[b:b + 1, :].astype(o_ref.dtype)
        o_ref[r + L + 2:r + L + 3, :] = x_out[b:b + 1, :].astype(o_ref.dtype)
        o_ref[r + L + 3:r + L + 4, :] = fin.astype(o_ref.dtype)


def build_inp(x, temb_in, clip_s, t5_flat, p):
    n_rows = x.shape[0] * SEQ
    args = (x, temb_in, clip_s, t5_flat, p['final_emb'],
            p['x']['w1'], p['x']['b1'], p['x']['g'], p['x']['w2'], p['x']['b2'],
            p['clip_s']['w1'], p['clip_s']['b1'], p['clip_s']['g'],
            p['clip_s']['w2'], p['clip_s']['b2'],
            p['time']['w1'], p['time']['b1'], p['time']['w2'], p['time']['b2'],
            p['t5']['g_pre'], p['t5']['w1'], p['t5']['b1'],
            p['t5']['g_mid'], p['t5']['w2'], p['t5']['b2'])
    return pl.pallas_call(
        build_inp_kernel,
        out_shape=jax.ShapeDtypeStruct((n_rows, XF_WIDTH), jnp.float32),
        grid=(1,),
        in_specs=[_full_spec(a) for a in args],
        out_specs=pl.BlockSpec((n_rows, XF_WIDTH), lambda i: (0, 0)),
        compiler_params=pltpu.CompilerParams(vmem_limit_bytes=VMEM_LIMIT),
    )(*args)


# ---------------- Pallas kernel 2: full transformer decoder ----------------
# grid = (batch_tile, layer).  Activation slab (tile_rows, xf) lives in the
# output block (layer-constant index_map -> VMEM resident); per-layer weights
# are selected by the layer grid axis, so the next layer's weights are DMA'd
# while the current layer computes.
def transformer_kernel(bias_ref, x_ref, g1_ref, wqkv_ref, wo_ref, bo_ref,
                       g2_ref, wff1_ref, bff1_ref, wff2_ref, bff2_ref,
                       gf_ref, o_ref):
    layer = pl.program_id(1)

    @pl.when(layer == 0)
    def _init():
        o_ref[...] = x_ref[...]

    x = o_ref[...].astype(jnp.float32)                 # (M, D) resident slab
    m_rows = x.shape[0]
    bias = bias_ref[...]

    def rmsnorm(v, g):
        # x-transformers RMSNorm: F.normalize(x, dim=-1) * sqrt(D) * g
        return v * lax.rsqrt(jnp.mean(v * v, axis=-1, keepdims=True) + 1e-12) * g

    # ---- causal multi-head self-attention (pre-norm) ----
    xn = rmsnorm(x, g1_ref[0]).astype(jnp.bfloat16)
    qkv = jnp.dot(xn, wqkv_ref[0], preferred_element_type=jnp.float32)
    q = qkv[:, :XF_WIDTH]
    k = qkv[:, XF_WIDTH:2 * XF_WIDTH]
    v = qkv[:, 2 * XF_WIDTH:]

    attn = jnp.zeros((m_rows, XF_WIDTH), jnp.float32)
    # TODO(synk): a head-major QKV output layout would make the per-head lane
    # slices aligned at the real dim_head=32 config.
    for hh in range(XF_HEADS):
        s0 = hh * DIM_HEAD
        qh = q[:, s0:s0 + DIM_HEAD].astype(jnp.bfloat16)
        kh = k[:, s0:s0 + DIM_HEAD].astype(jnp.bfloat16)
        vh = v[:, s0:s0 + DIM_HEAD].astype(jnp.bfloat16)
        logits = lax.dot_general(qh, kh, (((1,), (1,)), ((), ())),
                                 preferred_element_type=jnp.float32)
        logits = logits * (DIM_HEAD ** -0.5) + bias
        p = jnp.exp(logits - jnp.max(logits, axis=-1, keepdims=True))
        p = p * pl.reciprocal(jnp.sum(p, axis=-1, keepdims=True), approx=True)
        ctx = jnp.dot(p.astype(jnp.bfloat16), vh,
                      preferred_element_type=jnp.float32)
        # accumulate through head-hh rows of W_o: no concatenate over heads
        attn = attn + jnp.dot(ctx.astype(jnp.bfloat16), wo_ref[0, hh],
                              preferred_element_type=jnp.float32)
    x = x + attn + bo_ref[0]

    # ---- GEGLU feed-forward (pre-norm) ----
    xn = rmsnorm(x, g2_ref[0]).astype(jnp.bfloat16)
    u = jnp.dot(xn, wff1_ref[0], preferred_element_type=jnp.float32) + bff1_ref[0]
    a, gate = u[:, :FF_INNER], u[:, FF_INNER:]
    # TODO(synk): PyTorch F.gelu default is exact erf; Mosaic has no erf
    # lowering, so the tanh approximation is used (small per-layer drift).
    ff = a * jax.nn.gelu(gate, approximate=True)
    x = x + jnp.dot(ff.astype(jnp.bfloat16), wff2_ref[0],
                    preferred_element_type=jnp.float32) + bff2_ref[0]

    o_ref[...] = x.astype(o_ref.dtype)

    @pl.when(layer == pl.num_programs(1) - 1)
    def _final_norm():
        xf = o_ref[...].astype(jnp.float32)
        o_ref[...] = rmsnorm(xf, gf_ref[...]).astype(o_ref.dtype)


def transformer(inp, lw, g_final):
    n_rows = inp.shape[0]
    n_seqs = n_rows // SEQ
    n_tiles = 1          # toy scale: one batch tile (block == full array)
    tile_rows = n_rows // n_tiles
    bias = make_attn_bias(n_seqs // n_tiles, SEQ)

    act_spec = pl.BlockSpec((tile_rows, XF_WIDTH), lambda b, l: (b, 0))

    def layer_spec(a):
        nd = a.ndim
        return pl.BlockSpec((1,) + a.shape[1:],
                            lambda b, l, _nd=nd: (l,) + (0,) * (_nd - 1))

    def const_spec(a):
        nd = a.ndim
        return pl.BlockSpec(a.shape, lambda b, l, _nd=nd: (0,) * _nd)

    layer_args = (lw['g1'], lw['wqkv'], lw['wo'], lw['bo'], lw['g2'],
                  lw['wff1'], lw['bff1'], lw['wff2'], lw['bff2'])
    return pl.pallas_call(
        transformer_kernel,
        out_shape=jax.ShapeDtypeStruct((n_rows, XF_WIDTH), jnp.float32),
        grid=(n_tiles, XF_LAYERS),
        in_specs=[const_spec(bias), act_spec]
                 + [layer_spec(a) for a in layer_args]
                 + [const_spec(g_final)],
        out_specs=act_spec,
        compiler_params=pltpu.CompilerParams(
            dimension_semantics=("parallel", "arbitrary"),
            vmem_limit_bytes=VMEM_LIMIT),
    )(bias, inp, *layer_args, g_final)


# ---------------- Pallas kernel 3: out_proj ----------------
def out_proj_kernel(z_ref, w1, b1, w2, b2, o_ref):
    h = jnp.dot(z_ref[...].astype(jnp.bfloat16), w1[...],
                preferred_element_type=jnp.float32) + b1[...]
    h = h * jax.nn.sigmoid(h)
    o = jnp.dot(h.astype(jnp.bfloat16), w2[...],
                preferred_element_type=jnp.float32) + b2[...]
    o_ref[...] = o.astype(o_ref.dtype)


def out_proj(z, po):
    dout = po['w2'].shape[1]
    args = (z, po['w1'], po['b1'], po['w2'], po['b2'])
    return pl.pallas_call(
        out_proj_kernel,
        out_shape=jax.ShapeDtypeStruct((z.shape[0], dout), jnp.float32),
        grid=(1,),
        in_specs=[_full_spec(a) for a in args],
        out_specs=pl.BlockSpec((z.shape[0], dout), lambda i: (0, 0)),
        compiler_params=pltpu.CompilerParams(vmem_limit_bytes=VMEM_LIMIT),
    )(*args)


# ---------------- deterministic parameter construction ----------------
def init_params(key):
    kit = iter(jax.random.split(key, 64))

    def W(din, dout, scale=0.02):
        # MXU-facing weights stored in bf16 at init (halves HBM/VMEM traffic).
        w = jax.random.normal(next(kit), (din, dout), jnp.float32) * scale
        return w.astype(jnp.bfloat16)

    def Bv(d):
        return jnp.zeros((1, d), jnp.float32)

    def G(d):
        return jnp.ones((1, d), jnp.float32)

    p = {}
    p['x'] = dict(w1=W(CLIP_WIDTH, XF_WIDTH), b1=Bv(XF_WIDTH), g=G(XF_WIDTH),
                  w2=W(XF_WIDTH, XF_WIDTH), b2=Bv(XF_WIDTH))
    p['clip_s'] = dict(w1=W(CLIP_WIDTH, XF_WIDTH), b1=Bv(XF_WIDTH), g=G(XF_WIDTH),
                       w2=W(XF_WIDTH, XF_WIDTH), b2=Bv(XF_WIDTH))
    p['time'] = dict(w1=W(XF_WIDTH, XF_WIDTH), b1=Bv(XF_WIDTH),
                     w2=W(XF_WIDTH, XF_WIDTH), b2=Bv(XF_WIDTH))
    p['t5'] = dict(g_pre=G(T5_DIM), w1=W(T5_DIM, XF_WIDTH), b1=Bv(XF_WIDTH),
                   g_mid=G(XF_WIDTH), w2=W(XF_WIDTH, XF_WIDTH), b2=Bv(XF_WIDTH))
    p['out'] = dict(w1=W(XF_WIDTH, CLIP_WIDTH), b1=Bv(CLIP_WIDTH),
                    w2=W(CLIP_WIDTH, CLIP_WIDTH), b2=Bv(CLIP_WIDTH))
    p['final_emb'] = jax.random.normal(next(kit), (1, XF_WIDTH), jnp.float32)

    layers = []
    for _ in range(XF_LAYERS):
        layers.append(dict(
            g1=G(XF_WIDTH),
            wqkv=W(XF_WIDTH, 3 * XF_WIDTH),          # fused QKV projection
            # W_o stored head-major (H, dh, D): per-head row blocks load clean
            wo=W(XF_WIDTH, XF_WIDTH).reshape(XF_HEADS, DIM_HEAD, XF_WIDTH),
            bo=Bv(XF_WIDTH),
            g2=G(XF_WIDTH),
            wff1=W(XF_WIDTH, 2 * FF_INNER), bff1=Bv(2 * FF_INNER),
            wff2=W(FF_INNER, XF_WIDTH), bff2=Bv(XF_WIDTH)))
    # stack per-layer weights along a leading layer axis (layer grid axis)
    p['layers'] = {k: jnp.stack([lyr[k] for lyr in layers], axis=0)
                   for k in layers[0]}
    p['g_final'] = G(XF_WIDTH)
    return p


# ---------------- ClipPrior.forward (default config path) ----------------
def clip_prior_forward(params, x, timesteps, t5_word_emb, clip_sentence_emb,
                       emb_4_vocab):
    # emb_4_vocab is only used when use_vocab=True (default False) -> unused.
    Bx = x.shape[0]
    temb_in = timestep_embedding(timesteps, XF_WIDTH)
    t5_flat = t5_word_emb.reshape(Bx * L, T5_DIM)

    # inp = cat([t5_proj(t5), clip_sentence_proj(c), time_embed(t), x_proj(x),
    #            final_emb], dim=1), flattened to (B*SEQ, xf)
    inp = build_inp(x, temb_in, clip_sentence_emb, t5_flat, params)
    # out = transformer(inp)
    h = transformer(inp, params['layers'], params['g_final'])
    # out = out_proj(out[:, -1])   (testing=False branch)
    last = h.reshape(Bx, SEQ, XF_WIDTH)[:, -1]
    return out_proj(last, params['out'])                  # (B, clip_width)


if __name__ == "__main__":
    params = init_params(jax.random.PRNGKey(42))

    key = jax.random.PRNGKey(0)
    kx, kt5, kcs, kv = jax.random.split(key, 4)
    x = jax.random.normal(kx, (B, CLIP_WIDTH), jnp.float32)
    timesteps = jnp.arange(B, dtype=jnp.int32) * 10
    t5_word_emb = jax.random.normal(kt5, (B, L, T5_DIM), jnp.float32)
    clip_sentence_emb = jax.random.normal(kcs, (B, CLIP_WIDTH), jnp.float32)
    emb_4_vocab = jax.random.normal(kv, (B, CLIP_WIDTH), jnp.float32)

    out = clip_prior_forward(params, x, timesteps, t5_word_emb,
                             clip_sentence_emb, emb_4_vocab)
    jax.block_until_ready(out)
    assert out.shape == (B, CLIP_WIDTH), out.shape
    assert bool(jnp.all(jnp.isfinite(out)))
    print("KERNEL_OK")
</pallas_src>

<mosaic_0001>
module attributes {stable_mosaic.version = 11 : i64} {
  func.func @build_inp_kernel(%arg0: i32, %arg1: memref<2x48xf32, #tpu.memory_space<vmem>>, %arg2: memref<2x32xf32, #tpu.memory_space<vmem>>, %arg3: memref<2x48xf32, #tpu.memory_space<vmem>>, %arg4: memref<16x32xf32, #tpu.memory_space<vmem>>, %arg5: memref<1x32xf32, #tpu.memory_space<vmem>>, %arg6: memref<48x32xbf16, #tpu.memory_space<vmem>>, %arg7: memref<1x32xf32, #tpu.memory_space<vmem>>, %arg8: memref<1x32xf32, #tpu.memory_space<vmem>>, %arg9: memref<32x32xbf16, #tpu.memory_space<vmem>>, %arg10: memref<1x32xf32, #tpu.memory_space<vmem>>, %arg11: memref<48x32xbf16, #tpu.memory_space<vmem>>, %arg12: memref<1x32xf32, #tpu.memory_space<vmem>>, %arg13: memref<1x32xf32, #tpu.memory_space<vmem>>, %arg14: memref<32x32xbf16, #tpu.memory_space<vmem>>, %arg15: memref<1x32xf32, #tpu.memory_space<vmem>>, %arg16: memref<32x32xbf16, #tpu.memory_space<vmem>>, %arg17: memref<1x32xf32, #tpu.memory_space<vmem>>, %arg18: memref<32x32xbf16, #tpu.memory_space<vmem>>, %arg19: memref<1x32xf32, #tpu.memory_space<vmem>>, %arg20: memref<1x32xf32, #tpu.memory_space<vmem>>, %arg21: memref<32x32xbf16, #tpu.memory_space<vmem>>, %arg22: memref<1x32xf32, #tpu.memory_space<vmem>>, %arg23: memref<1x32xf32, #tpu.memory_space<vmem>>, %arg24: memref<32x32xbf16, #tpu.memory_space<vmem>>, %arg25: memref<1x32xf32, #tpu.memory_space<vmem>>, %arg26: memref<24x32xf32, #tpu.memory_space<vmem>>) attributes {dimension_semantics = [#tpu.dimension_semantics<arbitrary>], iteration_bounds = array<i64: 1>, scalar_prefetch = 0 : i64, scratch_operands = 0 : i64, tpu.core_type = #tpu.core_type<tc>, window_params = [{pipeline_mode = #tpu.pipeline_mode<synchronous>, transform_indices = @transform_0, window_bounds = array<i64: 2, 48>}, {pipeline_mode = #tpu.pipeline_mode<synchronous>, transform_indices = @transform_1, window_bounds = array<i64: 2, 32>}, {pipeline_mode = #tpu.pipeline_mode<synchronous>, transform_indices = @transform_2, window_bounds = array<i64: 2, 48>}, {pipeline_mode = #tpu.pipeline_mode<synchronous>, transform_indices = @transform_3, window_bounds = array<i64: 16, 32>}, {pipeline_mode = #tpu.pipeline_mode<synchronous>, transform_indices = @transform_4, window_bounds = array<i64: 1, 32>}, {pipeline_mode = #tpu.pipeline_mode<synchronous>, transform_indices = @transform_5, window_bounds = array<i64: 48, 32>}, {pipeline_mode = #tpu.pipeline_mode<synchronous>, transform_indices = @transform_6, window_bounds = array<i64: 1, 32>}, {pipeline_mode = #tpu.pipeline_mode<synchronous>, transform_indices = @transform_7, window_bounds = array<i64: 1, 32>}, {pipeline_mode = #tpu.pipeline_mode<synchronous>, transform_indices = @transform_8, window_bounds = array<i64: 32, 32>}, {pipeline_mode = #tpu.pipeline_mode<synchronous>, transform_indices = @transform_9, window_bounds = array<i64: 1, 32>}, {pipeline_mode = #tpu.pipeline_mode<synchronous>, transform_indices = @transform_10, window_bounds = array<i64: 48, 32>}, {pipeline_mode = #tpu.pipeline_mode<synchronous>, transform_indices = @transform_11, window_bounds = array<i64: 1, 32>}, {pipeline_mode = #tpu.pipeline_mode<synchronous>, transform_indices = @transform_12, window_bounds = array<i64: 1, 32>}, {pipeline_mode = #tpu.pipeline_mode<synchronous>, transform_indices = @transform_13, window_bounds = array<i64: 32, 32>}, {pipeline_mode = #tpu.pipeline_mode<synchronous>, transform_indices = @transform_14, window_bounds = array<i64: 1, 32>}, {pipeline_mode = #tpu.pipeline_mode<synchronous>, transform_indices = @transform_15, window_bounds = array<i64: 32, 32>}, {pipeline_mode = #tpu.pipeline_mode<synchronous>, transform_indices = @transform_16, window_bounds = array<i64: 1, 32>}, {pipeline_mode = #tpu.pipeline_mode<synchronous>, transform_indices = @transform_17, window_bounds = array<i64: 32, 32>}, {pipeline_mode = #tpu.pipeline_mode<synchronous>, transform_indices = @transform_18, window_bounds = array<i64: 1, 32>}, {pipeline_mode = #tpu.pipeline_mode<synchronous>, transform_indices = @transform_19, window_bounds = array<i64: 1, 32>}, {pipeline_mode = #tpu.pipeline_mode<synchronous>, transform_indices = @transform_20, window_bounds = array<i64: 32, 32>}, {pipeline_mode = #tpu.pipeline_mode<synchronous>, transform_indices = @transform_21, window_bounds = array<i64: 1, 32>}, {pipeline_mode = #tpu.pipeline_mode<synchronous>, transform_indices = @transform_22, window_bounds = array<i64: 1, 32>}, {pipeline_mode = #tpu.pipeline_mode<synchronous>, transform_indices = @transform_23, window_bounds = array<i64: 32, 32>}, {pipeline_mode = #tpu.pipeline_mode<synchronous>, transform_indices = @transform_24, window_bounds = array<i64: 1, 32>}, {pipeline_mode = #tpu.pipeline_mode<synchronous>, transform_indices = @transform_25, window_bounds = array<i64: 24, 32>}]} {
    %c0 = arith.constant 0 : index
    %c0_0 = arith.constant 0 : index
    %0 = vector.load %arg1[%c0, %c0_0] : memref<2x48xf32, #tpu.memory_space<vmem>>, vector<2x48xf32>
    %1 = arith.truncf %0 : vector<2x48xf32> to vector<2x48xbf16>
    %c0_1 = arith.constant 0 : index
    %c0_2 = arith.constant 0 : index
    %2 = vector.load %arg6[%c0_1, %c0_2] : memref<48x32xbf16, #tpu.memory_space<vmem>>, vector<48x32xbf16>
    %cst = arith.constant dense<0.000000e+00> : vector<2x32xf32>
    %3 = tpu.matmul %1, %2, %cst {dimension_numbers = #tpu.dot_dimension_numbers<[1], [0], [0], [1], [0, 0, 1, 1], [], []>} : vector<2x48xbf16>, vector<48x32xbf16>, vector<2x32xf32> -> vector<2x32xf32>
    %c0_3 = arith.constant 0 : index
    %c0_4 = arith.constant 0 : index
    %4 = vector.load %arg7[%c0_3, %c0_4] : memref<1x32xf32, #tpu.memory_space<vmem>>, vector<1x32xf32>
    %5 = vector.broadcast %4 : vector<1x32xf32> to vector<2x32xf32>
    %6 = arith.addf %3, %5 : vector<2x32xf32>
    %7 = arith.negf %6 : vector<2x32xf32>
    %8 = math.exp %7 : vector<2x32xf32>
    %cst_5 = arith.constant 1.000000e+00 : f32
    %9 = vector.broadcast %cst_5 : f32 to vector<2x32xf32>
    %10 = arith.addf %9, %8 : vector<2x32xf32>
    %11 = arith.divf %9, %10 : vector<2x32xf32>
    %12 = arith.mulf %6, %11 : vector<2x32xf32>
    %cst_6 = arith.constant dense<0.000000e+00> : vector<2xf32>
    %13 = vector.multi_reduction <add>, %12, %cst_6 [1] : vector<2x32xf32> to vector<2xf32>
    %14 = vector.shape_cast %13 : vector<2xf32> to vector<2x1xf32>
    %cst_7 = arith.constant 3.200000e+01 : f32
    %15 = vector.broadcast %cst_7 : f32 to vector<2x1xf32>
    %16 = arith.divf %14, %15 : vector<2x1xf32>
    %17 = vector.broadcast %16 : vector<2x1xf32> to vector<2x32xf32>
    %18 = arith.subf %12, %17 : vector<2x32xf32>
    %19 = arith.mulf %18, %18 : vector<2x32xf32>
    %cst_8 = arith.constant dense<0.000000e+00> : vector<2xf32>
    %20 = vector.multi_reduction <add>, %19, %cst_8 [1] : vector<2x32xf32> to vector<2xf32>
    %21 = vector.shape_cast %20 : vector<2xf32> to vector<2x1xf32>
    %cst_9 = arith.constant 3.200000e+01 : f32
    %22 = vector.broadcast %cst_9 : f32 to vector<2x1xf32>
    %23 = arith.divf %21, %22 : vector<2x1xf32>
    %24 = vector.broadcast %16 : vector<2x1xf32> to vector<2x32xf32>
    %25 = arith.subf %12, %24 : vector<2x32xf32>
    %cst_10 = arith.constant 9.99999974E-6 : f32
    %26 = vector.broadcast %cst_10 : f32 to vector<2x1xf32>
    %27 = arith.addf %23, %26 : vector<2x1xf32>
    %28 = math.rsqrt %27 : vector<2x1xf32>
    %29 = vector.broadcast %28 : vector<2x1xf32> to vector<2x32xf32>
    %30 = arith.mulf %25, %29 : vector<2x32xf32>
    %c0_11 = arith.constant 0 : index
    %c0_12 = arith.constant 0 : index
    %31 = vector.load %arg8[%c0_11, %c0_12] : memref<1x32xf32, #tpu.memory_space<vmem>>, vector<1x32xf32>
    %32 = vector.broadcast %31 : vector<1x32xf32> to vector<2x32xf32>
    %33 = arith.mulf %30, %32 : vector<2x32xf32>
    %34 = arith.truncf %33 : vector<2x32xf32> to vector<2x32xbf16>
    %c0_13 = arith.constant 0 : index
    %c0_14 = arith.constant 0 : index
    %35 = vector.load %arg9[%c0_13, %c0_14] : memref<32x32xbf16, #tpu.memory_space<vmem>>, vector<32x32xbf16>
    %cst_15 = arith.constant dense<0.000000e+00> : vector<2x32xf32>
    %36 = tpu.matmul %34, %35, %cst_15 {dimension_numbers = #tpu.dot_dimension_numbers<[1], [0], [0], [1], [0, 0, 1, 1], [], []>} : vector<2x32xbf16>, vector<32x32xbf16>, vector<2x32xf32> -> vector<2x32xf32>
    %c0_16 = arith.constant 0 : index
    %c0_17 = arith.constant 0 : index
    %37 = vector.load %arg10[%c0_16, %c0_17] : memref<1x32xf32, #tpu.memory_space<vmem>>, vector<1x32xf32>
    %38 = vector.broadcast %37 : vector<1x32xf32> to vector<2x32xf32>
    %39 = arith.addf %36, %38 : vector<2x32xf32>
    %c0_18 = arith.constant 0 : index
    %c0_19 = arith.constant 0 : index
    %40 = vector.load %arg3[%c0_18, %c0_19] : memref<2x48xf32, #tpu.memory_space<vmem>>, vector<2x48xf32>
    %41 = arith.truncf %40 : vector<2x48xf32> to vector<2x48xbf16>
    %c0_20 = arith.constant 0 : index
    %c0_21 = arith.constant 0 : index
    %42 = vector.load %arg11[%c0_20, %c0_21] : memref<48x32xbf16, #tpu.memory_space<vmem>>, vector<48x32xbf16>
    %cst_22 = arith.constant dense<0.000000e+00> : vector<2x32xf32>
    %43 = tpu.matmul %41, %42, %cst_22 {dimension_numbers = #tpu.dot_dimension_numbers<[1], [0], [0], [1], [0, 0, 1, 1], [], []>} : vector<2x48xbf16>, vector<48x32xbf16>, vector<2x32xf32> -> vector<2x32xf32>
    %c0_23 = arith.constant 0 : index
    %c0_24 = arith.constant 0 : index
    %44 = vector.load %arg12[%c0_23, %c0_24] : memref<1x32xf32, #tpu.memory_space<vmem>>, vector<1x32xf32>
    %45 = vector.broadcast %44 : vector<1x32xf32> to vector<2x32xf32>
    %46 = arith.addf %43, %45 : vector<2x32xf32>
    %47 = arith.negf %46 : vector<2x32xf32>
    %48 = math.exp %47 : vector<2x32xf32>
    %cst_25 = arith.constant 1.000000e+00 : f32
    %49 = vector.broadcast %cst_25 : f32 to vector<2x32xf32>
    %50 = arith.addf %49, %48 : vector<2x32xf32>
    %51 = arith.divf %49, %50 : vector<2x32xf32>
    %52 = arith.mulf %46, %51 : vector<2x32xf32>
    %cst_26 = arith.constant dense<0.000000e+00> : vector<2xf32>
    %53 = vector.multi_reduction <add>, %52, %cst_26 [1] : vector<2x32xf32> to vector<2xf32>
    %54 = vector.shape_cast %53 : vector<2xf32> to vector<2x1xf32>
    %cst_27 = arith.constant 3.200000e+01 : f32
    %55 = vector.broadcast %cst_27 : f32 to vector<2x1xf32>
    %56 = arith.divf %54, %55 : vector<2x1xf32>
    %57 = vector.broadcast %56 : vector<2x1xf32> to vector<2x32xf32>
    %58 = arith.subf %52, %57 : vector<2x32xf32>
    %59 = arith.mulf %58, %58 : vector<2x32xf32>
    %cst_28 = arith.constant dense<0.000000e+00> : vector<2xf32>
    %60 = vector.multi_reduction <add>, %59, %cst_28 [1] : vector<2x32xf32> to vector<2xf32>
    %61 = vector.shape_cast %60 : vector<2xf32> to vector<2x1xf32>
    %cst_29 = arith.constant 3.200000e+01 : f32
    %62 = vector.broadcast %cst_29 : f32 to vector<2x1xf32>
    %63 = arith.divf %61, %62 : vector<2x1xf32>
    %64 = vector.broadcast %56 : vector<2x1xf32> to vector<2x32xf32>
    %65 = arith.subf %52, %64 : vector<2x32xf32>
    %cst_30 = arith.constant 9.99999974E-6 : f32
    %66 = vector.broadcast %cst_30 : f32 to vector<2x1xf32>
    %67 = arith.addf %63, %66 : vector<2x1xf32>
    %68 = math.rsqrt %67 : vector<2x1xf32>
    %69 = vector.broadcast %68 : vector<2x1xf32> to vector<2x32xf32>
    %70 = arith.mulf %65, %69 : vector<2x32xf32>
    %c0_31 = arith.constant 0 : index
    %c0_32 = arith.constant 0 : index
    %71 = vector.load %arg13[%c0_31, %c0_32] : memref<1x32xf32, #tpu.memory_space<vmem>>, vector<1x32xf32>
    %72 = vector.broadcast %71 : vector<1x32xf32> to vector<2x32xf32>
    %73 = arith.mulf %70, %72 : vector<2x32xf32>
    %74 = arith.truncf %73 : vector<2x32xf32> to vector<2x32xbf16>
    %c0_33 = arith.constant 0 : index
    %c0_34 = arith.constant 0 : index
    %75 = vector.load %arg14[%c0_33, %c0_34] : memref<32x32xbf16, #tpu.memory_space<vmem>>, vector<32x32xbf16>
    %cst_35 = arith.constant dense<0.000000e+00> : vector<2x32xf32>
    %76 = tpu.matmul %74, %75, %cst_35 {dimension_numbers = #tpu.dot_dimension_numbers<[1], [0], [0], [1], [0, 0, 1, 1], [], []>} : vector<2x32xbf16>, vector<32x32xbf16>, vector<2x32xf32> -> vector<2x32xf32>
    %c0_36 = arith.constant 0 : index
    %c0_37 = arith.constant 0 : index
    %77 = vector.load %arg15[%c0_36, %c0_37] : memref<1x32xf32, #tpu.memory_space<vmem>>, vector<1x32xf32>
    %78 = vector.broadcast %77 : vector<1x32xf32> to vector<2x32xf32>
    %79 = arith.addf %76, %78 : vector<2x32xf32>
    %c0_38 = arith.constant 0 : index
    %c0_39 = arith.constant 0 : index
    %80 = vector.load %arg2[%c0_38, %c0_39] : memref<2x32xf32, #tpu.memory_space<vmem>>, vector<2x32xf32>
    %81 = arith.truncf %80 : vector<2x32xf32> to vector<2x32xbf16>
    %c0_40 = arith.constant 0 : index
    %c0_41 = arith.constant 0 : index
    %82 = vector.load %arg16[%c0_40, %c0_41] : memref<32x32xbf16, #tpu.memory_space<vmem>>, vector<32x32xbf16>
    %cst_42 = arith.constant dense<0.000000e+00> : vector<2x32xf32>
    %83 = tpu.matmul %81, %82, %cst_42 {dimension_numbers = #tpu.dot_dimension_numbers<[1], [0], [0], [1], [0, 0, 1, 1], [], []>} : vector<2x32xbf16>, vector<32x32xbf16>, vector<2x32xf32> -> vector<2x32xf32>
    %c0_43 = arith.constant 0 : index
    %c0_44 = arith.constant 0 : index
    %84 = vector.load %arg17[%c0_43, %c0_44] : memref<1x32xf32, #tpu.memory_space<vmem>>, vector<1x32xf32>
    %85 = vector.broadcast %84 : vector<1x32xf32> to vector<2x32xf32>
    %86 = arith.addf %83, %85 : vector<2x32xf32>
    %87 = arith.negf %86 : vector<2x32xf32>
    %88 = math.exp %87 : vector<2x32xf32>
    %cst_45 = arith.constant 1.000000e+00 : f32
    %89 = vector.broadcast %cst_45 : f32 to vector<2x32xf32>
    %90 = arith.addf %89, %88 : vector<2x32xf32>
    %91 = arith.divf %89, %90 : vector<2x32xf32>
    %92 = arith.mulf %86, %91 : vector<2x32xf32>
    %93 = arith.truncf %92 : vector<2x32xf32> to vector<2x32xbf16>
    %c0_46 = arith.constant 0 : index
    %c0_47 = arith.constant 0 : index
    %94 = vector.load %arg18[%c0_46, %c0_47] : memref<32x32xbf16, #tpu.memory_space<vmem>>, vector<32x32xbf16>
    %cst_48 = arith.constant dense<0.000000e+00> : vector<2x32xf32>
    %95 = tpu.matmul %93, %94, %cst_48 {dimension_numbers = #tpu.dot_dimension_numbers<[1], [0], [0], [1], [0, 0, 1, 1], [], []>} : vector<2x32xbf16>, vector<32x32xbf16>, vector<2x32xf32> -> vector<2x32xf32>
    %c0_49 = arith.constant 0 : index
    %c0_50 = arith.constant 0 : index
    %96 = vector.load %arg19[%c0_49, %c0_50] : memref<1x32xf32, #tpu.memory_space<vmem>>, vector<1x32xf32>
    %97 = vector.broadcast %96 : vector<1x32xf32> to vector<2x32xf32>
    %98 = arith.addf %95, %97 : vector<2x32xf32>
    %c0_51 = arith.constant 0 : index
    %c0_52 = arith.constant 0 : index
    %99 = vector.load %arg4[%c0_51, %c0_52] : memref<16x32xf32, #tpu.memory_space<vmem>>, vector<16x32xf32>
    %cst_53 = arith.constant dense<0.000000e+00> : vector<16xf32>
    %100 = vector.multi_reduction <add>, %99, %cst_53 [1] : vector<16x32xf32> to vector<16xf32>
    %101 = vector.shape_cast %100 : vector<16xf32> to vector<16x1xf32>
    %cst_54 = arith.constant 3.200000e+01 : f32
    %102 = vector.broadcast %cst_54 : f32 to vector<16x1xf32>
    %103 = arith.divf %101, %102 : vector<16x1xf32>
    %104 = vector.broadcast %103 : vector<16x1xf32> to vector<16x32xf32>
    %105 = arith.subf %99, %104 : vector<16x32xf32>
    %106 = arith.mulf %105, %105 : vector<16x32xf32>
    %cst_55 = arith.constant dense<0.000000e+00> : vector<16xf32>
    %107 = vector.multi_reduction <add>, %106, %cst_55 [1] : vector<16x32xf32> to vector<16xf32>
    %108 = vector.shape_cast %107 : vector<16xf32> to vector<16x1xf32>
    %cst_56 = arith.constant 3.200000e+01 : f32
    %109 = vector.broadcast %cst_56 : f32 to vector<16x1xf32>
    %110 = arith.divf %108, %109 : vector<16x1xf32>
    %111 = vector.broadcast %103 : vector<16x1xf32> to vector<16x32xf32>
    %112 = arith.subf %99, %111 : vector<16x32xf32>
    %cst_57 = arith.constant 9.99999974E-6 : f32
    %113 = vector.broadcast %cst_57 : f32 to vector<16x1xf32>
    %114 = arith.addf %110, %113 : vector<16x1xf32>
    %115 = math.rsqrt %114 : vector<16x1xf32>
    %116 = vector.broadcast %115 : vector<16x1xf32> to vector<16x32xf32>
    %117 = arith.mulf %112, %116 : vector<16x32xf32>
    %c0_58 = arith.constant 0 : index
    %c0_59 = arith.constant 0 : index
    %118 = vector.load %arg20[%c0_58, %c0_59] : memref<1x32xf32, #tpu.memory_space<vmem>>, vector<1x32xf32>
    %119 = vector.broadcast %118 : vector<1x32xf32> to vector<16x32xf32>
    %120 = arith.mulf %117, %119 : vector<16x32xf32>
    %121 = arith.truncf %120 : vector<16x32xf32> to vector<16x32xbf16>
    %c0_60 = arith.constant 0 : index
    %c0_61 = arith.constant 0 : index
    %122 = vector.load %arg21[%c0_60, %c0_61] : memref<32x32xbf16, #tpu.memory_space<vmem>>, vector<32x32xbf16>
    %cst_62 = arith.constant dense<0.000000e+00> : vector<16x32xf32>
    %123 = tpu.matmul %121, %122, %cst_62 {dimension_numbers = #tpu.dot_dimension_numbers<[1], [0], [0], [1], [0, 0, 1, 1], [], []>} : vector<16x32xbf16>, vector<32x32xbf16>, vector<16x32xf32> -> vector<16x32xf32>
    %c0_63 = arith.constant 0 : index
    %c0_64 = arith.constant 0 : index
    %124 = vector.load %arg22[%c0_63, %c0_64] : memref<1x32xf32, #tpu.memory_space<vmem>>, vector<1x32xf32>
    %125 = vector.broadcast %124 : vector<1x32xf32> to vector<16x32xf32>
    %126 = arith.addf %123, %125 : vector<16x32xf32>
    %127 = arith.negf %126 : vector<16x32xf32>
    %128 = math.exp %127 : vector<16x32xf32>
    %cst_65 = arith.constant 1.000000e+00 : f32
    %129 = vector.broadcast %cst_65 : f32 to vector<16x32xf32>
    %130 = arith.addf %129, %128 : vector<16x32xf32>
    %131 = arith.divf %129, %130 : vector<16x32xf32>
    %132 = arith.mulf %126, %131 : vector<16x32xf32>
    %cst_66 = arith.constant dense<0.000000e+00> : vector<16xf32>
    %133 = vector.multi_reduction <add>, %132, %cst_66 [1] : vector<16x32xf32> to vector<16xf32>
    %134 = vector.shape_cast %133 : vector<16xf32> to vector<16x1xf32>
    %cst_67 = arith.constant 3.200000e+01 : f32
    %135 = vector.broadcast %cst_67 : f32 to vector<16x1xf32>
    %136 = arith.divf %134, %135 : vector<16x1xf32>
    %137 = vector.broadcast %136 : vector<16x1xf32> to vector<16x32xf32>
    %138 = arith.subf %132, %137 : vector<16x32xf32>
    %139 = arith.mulf %138, %138 : vector<16x32xf32>
    %cst_68 = arith.constant dense<0.000000e+00> : vector<16xf32>
    %140 = vector.multi_reduction <add>, %139, %cst_68 [1] : vector<16x32xf32> to vector<16xf32>
    %141 = vector.shape_cast %140 : vector<16xf32> to vector<16x1xf32>
    %cst_69 = arith.constant 3.200000e+01 : f32
    %142 = vector.broadcast %cst_69 : f32 to vector<16x1xf32>
    %143 = arith.divf %141, %142 : vector<16x1xf32>
    %144 = vector.broadcast %136 : vector<16x1xf32> to vector<16x32xf32>
    %145 = arith.subf %132, %144 : vector<16x32xf32>
    %cst_70 = arith.constant 9.99999974E-6 : f32
    %146 = vector.broadcast %cst_70 : f32 to vector<16x1xf32>
    %147 = arith.addf %143, %146 : vector<16x1xf32>
    %148 = math.rsqrt %147 : vector<16x1xf32>
    %149 = vector.broadcast %148 : vector<16x1xf32> to vector<16x32xf32>
    %150 = arith.mulf %145, %149 : vector<16x32xf32>
    %c0_71 = arith.constant 0 : index
    %c0_72 = arith.constant 0 : index
    %151 = vector.load %arg23[%c0_71, %c0_72] : memref<1x32xf32, #tpu.memory_space<vmem>>, vector<1x32xf32>
    %152 = vector.broadcast %151 : vector<1x32xf32> to vector<16x32xf32>
    %153 = arith.mulf %150, %152 : vector<16x32xf32>
    %154 = arith.truncf %153 : vector<16x32xf32> to vector<16x32xbf16>
    %c0_73 = arith.constant 0 : index
    %c0_74 = arith.constant 0 : index
    %155 = vector.load %arg24[%c0_73, %c0_74] : memref<32x32xbf16, #tpu.memory_space<vmem>>, vector<32x32xbf16>
    %cst_75 = arith.constant dense<0.000000e+00> : vector<16x32xf32>
    %156 = tpu.matmul %154, %155, %cst_75 {dimension_numbers = #tpu.dot_dimension_numbers<[1], [0], [0], [1], [0, 0, 1, 1], [], []>} : vector<16x32xbf16>, vector<32x32xbf16>, vector<16x32xf32> -> vector<16x32xf32>
    %c0_76 = arith.constant 0 : index
    %c0_77 = arith.constant 0 : index
    %157 = vector.load %arg25[%c0_76, %c0_77] : memref<1x32xf32, #tpu.memory_space<vmem>>, vector<1x32xf32>
    %158 = vector.broadcast %157 : vector<1x32xf32> to vector<16x32xf32>
    %159 = arith.addf %156, %158 : vector<16x32xf32>
    %c0_78 = arith.constant 0 : index
    %c0_79 = arith.constant 0 : index
    %160 = vector.load %arg5[%c0_78, %c0_79] : memref<1x32xf32, #tpu.memory_space<vmem>>, vector<1x32xf32>
    %161 = vector.extract_strided_slice %159 {offsets = [0, 0], sizes = [8, 32], strides = [1, 1]} : vector<16x32xf32> to vector<8x32xf32>
    %c0_80 = arith.constant 0 : index
    %c0_81 = arith.constant 0 : index
    %162 = vector.load %arg26[%c0_80, %c0_81] : memref<24x32xf32, #tpu.memory_space<vmem>>, vector<8x32xf32>
    tpu.vector_store %arg26[%c0_80, %c0_81], %161 {strides = array<i32>} : memref<24x32xf32, #tpu.memory_space<vmem>>, vector<8x32xf32>,
    %163 = vector.extract_strided_slice %79 {offsets = [0, 0], sizes = [1, 32], strides = [1, 1]} : vector<2x32xf32> to vector<1x32xf32>
    %c8 = arith.constant 8 : index
    %c0_82 = arith.constant 0 : index
    %164 = vector.load %arg26[%c8, %c0_82] : memref<24x32xf32, #tpu.memory_space<vmem>>, vector<1x32xf32>
    tpu.vector_store %arg26[%c8, %c0_82], %163 {strides = array<i32>} : memref<24x32xf32, #tpu.memory_space<vmem>>, vector<1x32xf32>,
    %165 = vector.extract_strided_slice %98 {offsets = [0, 0], sizes = [1, 32], strides = [1, 1]} : vector<2x32xf32> to vector<1x32xf32>
    %c9 = arith.constant 9 : index
    %c0_83 = arith.constant 0 : index
    %166 = vector.load %arg26[%c9, %c0_83] : memref<24x32xf32, #tpu.memory_space<vmem>>, vector<1x32xf32>
    tpu.vector_store %arg26[%c9, %c0_83], %165 {strides = array<i32>} : memref<24x32xf32, #tpu.memory_space<vmem>>, vector<1x32xf32>,
    %167 = vector.extract_strided_slice %39 {offsets = [0, 0], sizes = [1, 32], strides = [1, 1]} : vector<2x32xf32> to vector<1x32xf32>
    %c10 = arith.constant 10 : index
    %c0_84 = arith.constant 0 : index
    %168 = vector.load %arg26[%c10, %c0_84] : memref<24x32xf32, #tpu.memory_space<vmem>>, vector<1x32xf32>
    tpu.vector_store %arg26[%c10, %c0_84], %167 {strides = array<i32>} : memref<24x32xf32, #tpu.memory_space<vmem>>, vector<1x32xf32>,
    %c11 = arith.constant 11 : index
    %c0_85 = arith.constant 0 : index
    %169 = vector.load %arg26[%c11, %c0_85] : memref<24x32xf32, #tpu.memory_space<vmem>>, vector<1x32xf32>
    tpu.vector_store %arg26[%c11, %c0_85], %160 {strides = array<i32>} : memref<24x32xf32, #tpu.memory_space<vmem>>, vector<1x32xf32>,
    %170 = vector.extract_strided_slice %159 {offsets = [8, 0], sizes = [8, 32], strides = [1, 1]} : vector<16x32xf32> to vector<8x32xf32>
    %c12 = arith.constant 12 : index
    %c0_86 = arith.constant 0 : index
    %171 = vector.load %arg26[%c12, %c0_86] : memref<24x32xf32, #tpu.memory_space<vmem>>, vector<8x32xf32>
    tpu.vector_store %arg26[%c12, %c0_86], %170 {strides = array<i32>} : memref<24x32xf32, #tpu.memory_space<vmem>>, vector<8x32xf32>,
    %172 = vector.extract_strided_slice %79 {offsets = [1, 0], sizes = [1, 32], strides = [1, 1]} : vector<2x32xf32> to vector<1x32xf32>
    %c20 = arith.constant 20 : index
    %c0_87 = arith.constant 0 : index
    %173 = vector.load %arg26[%c20, %c0_87] : memref<24x32xf32, #tpu.memory_space<vmem>>, vector<1x32xf32>
    tpu.vector_store %arg26[%c20, %c0_87], %172 {strides = array<i32>} : memref<24x32xf32, #tpu.memory_space<vmem>>, vector<1x32xf32>,
    %174 = vector.extract_strided_slice %98 {offsets = [1, 0], sizes = [1, 32], strides = [1, 1]} : vector<2x32xf32> to vector<1x32xf32>
    %c21 = arith.constant 21 : index
    %c0_88 = arith.constant 0 : index
    %175 = vector.load %arg26[%c21, %c0_88] : memref<24x32xf32, #tpu.memory_space<vmem>>, vector<1x32xf32>
    tpu.vector_store %arg26[%c21, %c0_88], %174 {strides = array<i32>} : memref<24x32xf32, #tpu.memory_space<vmem>>, vector<1x32xf32>,
    %176 = vector.extract_strided_slice %39 {offsets = [1, 0], sizes = [1, 32], strides = [1, 1]} : vector<2x32xf32> to vector<1x32xf32>
    %c22 = arith.constant 22 : index
    %c0_89 = arith.constant 0 : index
    %177 = vector.load %arg26[%c22, %c0_89] : memref<24x32xf32, #tpu.memory_space<vmem>>, vector<1x32xf32>
    tpu.vector_store %arg26[%c22, %c0_89], %176 {strides = array<i32>} : memref<24x32xf32, #tpu.memory_space<vmem>>, vector<1x32xf32>,
    %c23 = arith.constant 23 : index
    %c0_90 = arith.constant 0 : index
    %178 = vector.load %arg26[%c23, %c0_90] : memref<24x32xf32, #tpu.memory_space<vmem>>, vector<1x32xf32>
    tpu.vector_store %arg26[%c23, %c0_90], %160 {strides = array<i32>} : memref<24x32xf32, #tpu.memory_space<vmem>>, vector<1x32xf32>,
    return
  }
  func.func @transform_0(%arg0: i32) -> (i32, i32) {
    %c0_i32 = arith.constant 0 : i32
    %c0_i32_0 = arith.constant 0 : i32
    %c0_i32_1 = arith.constant 0 : i32
    return %c0_i32, %c0_i32_0 : i32, i32
  }
  func.func @transform_1(%arg0: i32) -> (i32, i32) {
    %c0_i32 = arith.constant 0 : i32
    %c0_i32_0 = arith.constant 0 : i32
    %c0_i32_1 = arith.constant 0 : i32
    return %c0_i32, %c0_i32_0 : i32, i32
  }
  func.func @transform_2(%arg0: i32) -> (i32, i32) {
    %c0_i32 = arith.constant 0 : i32
    %c0_i32_0 = arith.constant 0 : i32
    %c0_i32_1 = arith.constant 0 : i32
    return %c0_i32, %c0_i32_0 : i32, i32
  }
  func.func @transform_3(%arg0: i32) -> (i32, i32) {
    %c0_i32 = arith.constant 0 : i32
    %c0_i32_0 = arith.constant 0 : i32
    %c0_i32_1 = arith.constant 0 : i32
    return %c0_i32, %c0_i32_0 : i32, i32
  }
  func.func @transform_4(%arg0: i32) -> (i32, i32) {
    %c0_i32 = arith.constant 0 : i32
    %c0_i32_0 = arith.constant 0 : i32
    %c0_i32_1 = arith.constant 0 : i32
    return %c0_i32, %c0_i32_0 : i32, i32
  }
  func.func @transform_5(%arg0: i32) -> (i32, i32) {
    %c0_i32 = arith.constant 0 : i32
    %c0_i32_0 = arith.constant 0 : i32
    %c0_i32_1 = arith.constant 0 : i32
    return %c0_i32, %c0_i32_0 : i32, i32
  }
  func.func @transform_6(%arg0: i32) -> (i32, i32) {
    %c0_i32 = arith.constant 0 : i32
    %c0_i32_0 = arith.constant 0 : i32
    %c0_i32_1 = arith.constant 0 : i32
    return %c0_i32, %c0_i32_0 : i32, i32
  }
  func.func @transform_7(%arg0: i32) -> (i32, i32) {
    %c0_i32 = arith.constant 0 : i32
    %c0_i32_0 = arith.constant 0 : i32
    %c0_i32_1 = arith.constant 0 : i32
    return %c0_i32, %c0_i32_0 : i32, i32
  }
  func.func @transform_8(%arg0: i32) -> (i32, i32) {
    %c0_i32 = arith.constant 0 : i32
    %c0_i32_0 = arith.constant 0 : i32
    %c0_i32_1 = arith.constant 0 : i32
    return %c0_i32, %c0_i32_0 : i32, i32
  }
  func.func @transform_9(%arg0: i32) -> (i32, i32) {
    %c0_i32 = arith.constant 0 : i32
    %c0_i32_0 = arith.constant 0 : i32
    %c0_i32_1 = arith.constant 0 : i32
    return %c0_i32, %c0_i32_0 : i32, i32
  }
  func.func @transform_10(%arg0: i32) -> (i32, i32) {
    %c0_i32 = arith.constant 0 : i32
    %c0_i32_0 = arith.constant 0 : i32
    %c0_i32_1 = arith.constant 0 : i32
    return %c0_i32, %c0_i32_0 : i32, i32
  }
  func.func @transform_11(%arg0: i32) -> (i32, i32) {
    %c0_i32 = arith.constant 0 : i32
    %c0_i32_0 = arith.constant 0 : i32
    %c0_i32_1 = arith.constant 0 : i32
    return %c0_i32, %c0_i32_0 : i32, i32
  }
  func.func @transform_12(%arg0: i32) -> (i32, i32) {
    %c0_i32 = arith.constant 0 : i32
    %c0_i32_0 = arith.constant 0 : i32
    %c0_i32_1 = arith.constant 0 : i32
    return %c0_i32, %c0_i32_0 : i32, i32
  }
  func.func @transform_13(%arg0: i32) -> (i32, i32) {
    %c0_i32 = arith.constant 0 : i32
    %c0_i32_0 = arith.constant 0 : i32
    %c0_i32_1 = arith.constant 0 : i32
    return %c0_i32, %c0_i32_0 : i32, i32
  }
  func.func @transform_14(%arg0: i32) -> (i32, i32) {
    %c0_i32 = arith.constant 0 : i32
    %c0_i32_0 = arith.constant 0 : i32
    %c0_i32_1 = arith.constant 0 : i32
    return %c0_i32, %c0_i32_0 : i32, i32
  }
  func.func @transform_15(%arg0: i32) -> (i32, i32) {
    %c0_i32 = arith.constant 0 : i32
    %c0_i32_0 = arith.constant 0 : i32
    %c0_i32_1 = arith.constant 0 : i32
    return %c0_i32, %c0_i32_0 : i32, i32
  }
  func.func @transform_16(%arg0: i32) -> (i32, i32) {
    %c0_i32 = arith.constant 0 : i32
    %c0_i32_0 = arith.constant 0 : i32
    %c0_i32_1 = arith.constant 0 : i32
    return %c0_i32, %c0_i32_0 : i32, i32
  }
  func.func @transform_17(%arg0: i32) -> (i32, i32) {
    %c0_i32 = arith.constant 0 : i32
    %c0_i32_0 = arith.constant 0 : i32
    %c0_i32_1 = arith.constant 0 : i32
    return %c0_i32, %c0_i32_0 : i32, i32
  }
  func.func @transform_18(%arg0: i32) -> (i32, i32) {
    %c0_i32 = arith.constant 0 : i32
    %c0_i32_0 = arith.constant 0 : i32
    %c0_i32_1 = arith.constant 0 : i32
    return %c0_i32, %c0_i32_0 : i32, i32
  }
  func.func @transform_19(%arg0: i32) -> (i32, i32) {
    %c0_i32 = arith.constant 0 : i32
    %c0_i32_0 = arith.constant 0 : i32
    %c0_i32_1 = arith.constant 0 : i32
    return %c0_i32, %c0_i32_0 : i32, i32
  }
  func.func @transform_20(%arg0: i32) -> (i32, i32) {
    %c0_i32 = arith.constant 0 : i32
    %c0_i32_0 = arith.constant 0 : i32
    %c0_i32_1 = arith.constant 0 : i32
    return %c0_i32, %c0_i32_0 : i32, i32
  }
  func.func @transform_21(%arg0: i32) -> (i32, i32) {
    %c0_i32 = arith.constant 0 : i32
    %c0_i32_0 = arith.constant 0 : i32
    %c0_i32_1 = arith.constant 0 : i32
    return %c0_i32, %c0_i32_0 : i32, i32
  }
  func.func @transform_22(%arg0: i32) -> (i32, i32) {
    %c0_i32 = arith.constant 0 : i32
    %c0_i32_0 = arith.constant 0 : i32
    %c0_i32_1 = arith.constant 0 : i32
    return %c0_i32, %c0_i32_0 : i32, i32
  }
  func.func @transform_23(%arg0: i32) -> (i32, i32) {
    %c0_i32 = arith.constant 0 : i32
    %c0_i32_0 = arith.constant 0 : i32
    %c0_i32_1 = arith.constant 0 : i32
    return %c0_i32, %c0_i32_0 : i32, i32
  }
  func.func @transform_24(%arg0: i32) -> (i32, i32) {
    %c0_i32 = arith.constant 0 : i32
    %c0_i32_0 = arith.constant 0 : i32
    %c0_i32_1 = arith.constant 0 : i32
    return %c0_i32, %c0_i32_0 : i32, i32
  }
  func.func @transform_25(%arg0: i32) -> (i32, i32) {
    %c0_i32 = arith.constant 0 : i32
    %c0_i32_0 = arith.constant 0 : i32
    %c0_i32_1 = arith.constant 0 : i32
    return %c0_i32, %c0_i32_0 : i32, i32
  }
}

</mosaic_0001>

<bundles_post_ra>
// kernel: tpu_custom_call.1
= control target key start
LH: loop header
LB: loop body
LE: loop exit
PB: predicated region body
PF: predicated region fallthrough
CT: control target
= control target key end

     0   :  { %s1777_s0 = inlined_call_operand.hbm [shape: f32[2,48], index: 0, kind: input, shape index: {}]   ;;  %s1778_s1 = inlined_call_operand.hbm [shape: f32[2,32], index: 1, kind: input, shape index: {}]   ;;  %s1779_s2 = inlined_call_operand.hbm [shape: f32[2,48], index: 2, kind: input, shape index: {}]   ;;  %s1780_s3 = inlined_call_operand.vmem [shape: f32[16,32], index: 3, kind: input, shape index: {}]   ;;  %s1781_s4 = inlined_call_operand.vmem [shape: f32[1,32], index: 4, kind: input, shape index: {}]   ;;  %s1782_s5 = inlined_call_operand.vmem [shape: bf16[48,32], index: 5, kind: input, shape index: {}]   ;;  %s1783_s6 = inlined_call_operand.hbm [shape: f32[1,32], index: 6, kind: input, shape index: {}]   ;;  %s1784_s7 = inlined_call_operand.hbm [shape: f32[1,32], index: 7, kind: input, shape index: {}]   ;;  %s1785_s8 = inlined_call_operand.vmem [shape: bf16[32,32], index: 8, kind: input, shape index: {}]   ;;  %s1786_s9 = inlined_call_operand.hbm [shape: f32[1,32], index: 9, kind: input, shape index: {}]   ;;  %s1787_s10 = inlined_call_operand.vmem [shape: bf16[48,32], index: 10, kind: input, shape index: {}]   ;;  %s1788_s11 = inlined_call_operand.hbm [shape: f32[1,32], index: 11, kind: input, shape index: {}]   ;;  %s1789_s12 = inlined_call_operand.hbm [shape: f32[1,32], index: 12, kind: input, shape index: {}]   ;;  %s1790_s13 = inlined_call_operand.vmem [shape: bf16[32,32], index: 13, kind: input, shape index: {}]   ;;  %s1791_s14 = inlined_call_operand.hbm [shape: f32[1,32], index: 14, kind: input, shape index: {}]   ;;  %s1792_s15 = inlined_call_operand.vmem [shape: bf16[32,32], index: 15, kind: input, shape index: {}]   ;;  %s1793_s16 = inlined_call_operand.hbm [shape: f32[1,32], index: 16, kind: input, shape index: {}]   ;;  %s1794_s17 = inlined_call_operand.hbm [shape: bf16[32,32], index: 17, kind: input, shape index: {}]   ;;  %s1795_s18 = inlined_call_operand.hbm [shape: f32[1,32], index: 18, kind: input, shape index: {}]   ;;  %s1796_s19 = inlined_call_operand.hbm [shape: f32[1,32], index: 19, kind: input, shape index: {}]   ;;  %s1797_s20 = inlined_call_operand.vmem [shape: bf16[32,32], index: 20, kind: input, shape index: {}]   ;;  %s1798_s21 = inlined_call_operand.vmem [shape: f32[1,32], index: 21, kind: input, shape index: {}]   ;;  %s1799_s22 = inlined_call_operand.vmem [shape: f32[1,32], index: 22, kind: input, shape index: {}]   ;;  %s1800_s23 = inlined_call_operand.hbm [shape: bf16[32,32], index: 23, kind: input, shape index: {}]   ;;  %s1801_s24 = inlined_call_operand.vmem [shape: f32[1,32], index: 24, kind: input, shape index: {}]   ;;  %s1802_s25 = inlined_call_operand.hbm [shape: f32[24,32], index: 25, kind: output, shape index: {}]  }
   0x1   :  { %1806 = sst [smem:[#allocation35_spill]] %s1777_s0 }
   0x2   :  { %1807 = sst [smem:[#allocation36_spill]] %s1778_s1 }
   0x3   :  { %1808 = sst [smem:[#allocation37_spill]] %s1779_s2 }
   0x4   :  { %1809 = sst [smem:[#allocation38_spill]] %s1780_s3 }
   0x5   :  { %1810 = sst [smem:[#allocation39_spill]] %s1781_s4 }
   0x6   :  { %1811 = sst [smem:[#allocation40_spill]] %s1782_s5 }
   0x7   :  { %1812 = sst [smem:[#allocation41_spill]] %s1783_s6 }
   0x8   :  { %1813 = sst [smem:[#allocation42_spill]] %s1784_s7 }
   0x9   :  { %1814 = sst [smem:[#allocation43_spill]] %s1785_s8 }
   0xa   :  { %1815 = sst [smem:[#allocation44_spill]] %s1786_s9 }
   0xb   :  { %1816 = sst [smem:[#allocation45_spill]] %s1801_s24 }
   0xc   :  { %1817 = sst [smem:[#allocation46_spill]] %s1802_s25 }
   0xd   :  { %30 = vsyncpa [#allocation3], 0 }
   0xe   :  { %31 = vsyncpa [#allocation6], 0 }
   0xf   :  { %32 = vsyncpa [#allocation9], 0 }
  0x10   :  { %33 = vsyncpa [#allocation12], 0 }
  0x11   :  { %34 = vsyncpa [#allocation15], 0 }
  0x12   :  { %35 = vsyncpa [#allocation18], 0 }
  0x13   :  { %36 = vsyncpa [#allocation21], 0 }
  0x14   :  { %37 = vsyncpa [#allocation24], 0  ;;  %s1818_s6 = sld [smem:[#allocation36_spill]] }
  0x1a   :  { %s55_s30 = sshll.u32 %s1818_s6, 4  ;;  %s56_s30 = int_to_ptr.hbm [resolvable:$true] %s55_s30 }
  0x1b   :  { %38 = vsyncpa [#allocation4], 0  ;;  %s1445_s7 = smov [#allocation5]   ;;  %s1819_s8 = sld [smem:[#allocation41_spill]] }
  0x1c   :  { %s57_s3 = sshll.u32 %s1445_s7, 4  ;;  %s1446_s4 = smov [#allocation8]   ;;  %s58_s3 = int_to_ptr.vmem [resolvable:$true] %s57_s3 }
  0x1d   :  { %60 = dma.hbm_to_vmem [thread:$0]  %s56_s30, 32, %s58_s3, [#allocation6]  }
  0x1e   :  { %s85_s28 = sshll.u32 %s1446_s4, 4  ;;  %s1820_s0 = sld [smem:[#allocation44_spill]]  ;;  %s86_s28 = int_to_ptr.vmem [resolvable:$true] %s85_s28 }
  0x1f   :  { %s131_s6 = sshll.u32 %s1789_s12, 4  ;;  %s1447_s7 = smov [#allocation11]   ;;  %s132_s6 = int_to_ptr.hbm [resolvable:$true] %s131_s6 }
  0x20   :  { %s109_s24 = sshll.u32 %s1447_s7, 4  ;;  %s1448_s30 = smov [#allocation14]   ;;  %s110_s24 = int_to_ptr.vmem [resolvable:$true] %s109_s24 }
  0x21   :  { %s83_s27 = sshll.u32 %s1819_s8, 4  ;;  %s133_s3 = sshll.u32 %s1448_s30, 4  ;;  %s84_s27 = int_to_ptr.hbm [resolvable:$true] %s83_s27  ;;  %s134_s3 = int_to_ptr.vmem [resolvable:$true] %s133_s3 }
  0x22   :  { %88 = dma.hbm_to_vmem [thread:$0]  %s84_s27, 16, %s86_s28, [#allocation9]  }
  0x23   :  { %s157_s8 = sshll.u32 %s1793_s16, 4  ;;  %s181_s28 = sshll.u32 %s1795_s18, 4  ;;  %s158_s8 = int_to_ptr.hbm [resolvable:$true] %s157_s8  ;;  %s182_s28 = int_to_ptr.hbm [resolvable:$true] %s181_s28 }
  0x24   :  { %s107_s25 = sshll.u32 %s1820_s0, 4  ;;  %s1449_s9 = smov [#allocation17]   ;;  %s108_s25 = int_to_ptr.hbm [resolvable:$true] %s107_s25 }
  0x25   :  { %112 = dma.hbm_to_vmem [thread:$0]  %s108_s25, 16, %s110_s24, [#allocation12]  }
  0x26   :  { %136 = dma.hbm_to_vmem [thread:$0]  %s132_s6, 16, %s134_s3, [#allocation15]  }
  0x27   :  { %s159_s12 = sshll.u32 %s1449_s9, 4  ;;  %s1450_s5 = smov [#allocation20]   ;;  %s160_s12 = int_to_ptr.vmem [resolvable:$true] %s159_s12 }
  0x28   :  { %162 = dma.hbm_to_vmem [thread:$0]  %s158_s8, 16, %s160_s12, [#allocation18]  }
  0x29   :  { %s183_s24 = sshll.u32 %s1450_s5, 4  ;;  %s1821_s29 = sld [smem:[#allocation35_spill]]  ;;  %s184_s24 = int_to_ptr.vmem [resolvable:$true] %s183_s24 }
  0x2a   :  { %186 = dma.hbm_to_vmem [thread:$0]  %s182_s28, 16, %s184_s24, [#allocation21]  }
  0x2b   :  { %s1822_s7 = sld [smem:[#allocation37_spill]]  ;;  %s1451_s3 = smov [#allocation2]  }
  0x2c   :  { %s46_s18 = sshll.u32 %s1451_s3, 4  ;;  %s1452_s26 = smov [#allocation7]   ;;  %s47_s18 = int_to_ptr.vmem [resolvable:$true] %s46_s18 }
  0x2d   :  { %s68_s1 = sshll.u32 %s1452_s26, 4  ;;  %s1823_s27 = sld [smem:[#allocation42_spill]]  ;;  %s69_s1 = int_to_ptr.vmem [resolvable:$true] %s68_s1 }
  0x2e   :  { %s120_s5 = sshll.u32 %s1788_s11, 4  ;;  %s1453_s24 = smov [#allocation10]   ;;  %s121_s5 = int_to_ptr.hbm [resolvable:$true] %s120_s5 }
  0x2f   :  { %s44_s2 = sshll.u32 %s1821_s29, 4  ;;  %s96_s25 = sshll.u32 %s1453_s24, 4  ;;  %s45_s2 = int_to_ptr.hbm [resolvable:$true] %s44_s2  ;;  %s97_s25 = int_to_ptr.vmem [resolvable:$true] %s96_s25 }
  0x30   :  { %49 = dma.hbm_to_vmem [thread:$0]  %s45_s2, 32, %s47_s18, [#allocation3]  }
  0x31   :  { %s66_s30 = sshll.u32 %s1822_s7, 4  ;;  %s1454_s0 = smov [#allocation13]   ;;  %s67_s30 = int_to_ptr.hbm [resolvable:$true] %s66_s30 }
  0x32   :  { %71 = dma.hbm_to_vmem [thread:$0]  %s67_s30, 32, %s69_s1, [#allocation6]  }
  0x33   :  { %s94_s9 = sshll.u32 %s1823_s27, 4  ;;  %s122_s29 = sshll.u32 %s1454_s0, 4  ;;  %s95_s9 = int_to_ptr.hbm [resolvable:$true] %s94_s9  ;;  %s123_s29 = int_to_ptr.vmem [resolvable:$true] %s122_s29 }
  0x34   :  { %99 = dma.hbm_to_vmem [thread:$0]  %s95_s9, 16, %s97_s25, [#allocation9]  }
  0x35   :  { %s144_s6 = sshll.u32 %s1791_s14, 4  ;;  %s167_s3 = sshll.u32 %s1794_s17, 4  ;;  %s145_s6 = int_to_ptr.hbm [resolvable:$true] %s144_s6  ;;  %s168_s3 = int_to_ptr.hbm [resolvable:$true] %s167_s3 }
  0x36   :  { %125 = dma.hbm_to_vmem [thread:$0]  %s121_s5, 16, %s123_s29, [#allocation12]  }
  0x37   :  { %s1455_s18 = smov [#allocation16]   ;;  %s1456_s26 = smov [#allocation19]  }
  0x38   :  { %s146_s11 = sshll.u32 %s1455_s18, 4  ;;  %s169_s1 = sshll.u32 %s1456_s26, 4  ;;  %s147_s11 = int_to_ptr.vmem [resolvable:$true] %s146_s11  ;;  %s170_s1 = int_to_ptr.vmem [resolvable:$true] %s169_s1 }
  0x39   :  { %149 = dma.hbm_to_vmem [thread:$0]  %s145_s6, 16, %s147_s11, [#allocation15]  }
  0x3a   :  { %s1457_s8 = smov 64   ;;  %s1458_s4 = smov 4  }
  0x3b   :  { %175 = dma.hbm_to_vmem [thread:$0]  %s168_s3, 256, %s170_s1, [#allocation18], %s1457_s8, %s1457_s8, %s1458_s4  }
  0x3c   :  { %s192_s9 = sshll.u32 %s1796_s19, 4  ;;  %s1459_s12 = smov [#allocation22]   ;;  %s193_s9 = int_to_ptr.hbm [resolvable:$true] %s192_s9 }
  0x3d   :  { %s194_s28 = sshll.u32 %s1459_s12, 4  ;;  %s208_s24 = sshll.u32 %s1800_s23, 4  ;;  %s195_s28 = int_to_ptr.vmem [resolvable:$true] %s194_s28  ;;  %s209_s24 = int_to_ptr.hbm [resolvable:$true] %s208_s24 }
  0x3e   :  { %197 = dma.hbm_to_vmem [thread:$0]  %s193_s9, 16, %s195_s28, [#allocation21]  }
  0x3f   :  { %s1460_s25 = smov [#allocation23]  }
  0x40   :  { %s210_s0 = sshll.u32 %s1460_s25, 4  ;;  %s211_s0 = int_to_ptr.vmem [resolvable:$true] %s210_s0 }
  0x41   :  { %216 = dma.hbm_to_vmem [thread:$0]  %s209_s24, 256, %s211_s0, [#allocation24], %s1457_s8, %s1457_s8, %s1458_s4  }
  0x42   :  { %1427 = dma.done.wait [#allocation3], 32  }
  0x43   :  { %1428 = vsyncadd [#allocation3], 4294967264 }
  0x44   :  { %1429 = dma.done.wait [#allocation6], 64  }
  0x45   :  { %1430 = vsyncadd [#allocation6], 4294967232 }
  0x46   :  { %1431 = dma.done.wait [#allocation9], 32  }
  0x47   :  { %1432 = vsyncadd [#allocation9], 4294967264 }
  0x48   :  { %1433 = dma.done.wait [#allocation12], 32  }
  0x49   :  { %1434 = vsyncadd [#allocation12], 4294967264 }
  0x4a   :  { %1435 = dma.done.wait [#allocation15], 32  }
  0x4b   :  { %1436 = vsyncadd [#allocation15], 4294967264 }
  0x4c   :  { %1437 = dma.done.wait [#allocation18], 272  }
  0x4d   :  { %1438 = vsyncadd [#allocation18], 4294967024 }
  0x4e   :  { %1439 = dma.done.wait [#allocation21], 32  }
  0x4f   :  { %1440 = vsyncadd [#allocation21], 4294967264 }
  0x50   :  { %1441 = dma.done.wait [#allocation24], 256  }
  0x51   :  { %1442 = vsyncadd [#allocation24], 4294967040  ;;  %vm399_vm0 = vcmask 261120   ;;  %s1824_s29 = sld [smem:[#allocation38_spill]]  ;;  %v990_v2 = vld [vmem:[%s1787_s10 + $0x10] sm:$0xff]  ;;  %v989_v6 = vld [vmem:[%s1787_s10 + $0x8] sm:$0xff] }
  0x52   :  { %s1825_s6 = sld [smem:[#allocation40_spill]]  ;;  %454 = vmatpush.bf16.msra.mxu2 %v990_v2  ;;  %v276_v9 = vld [vmem:[#allocation2] sm:$0x3]  ;;  %v416_v11 = vld [vmem:[#allocation7] sm:$0x3]  ;;  %vm306_vm1 = vcmask 392192  }
  0x53   :  { %v988_v10 = vld [vmem:[%s1787_s10] sm:$0xff]  ;;  %v277_v12 = vpack.c.bf16 %v276_v9, %v276_v9  ;;  %v417_v13 = vpack.c.bf16 %v416_v11, %v416_v11  ;;  %v1461_v14 = vmov 32.0   ;;  %v1022_v35 = vld [vmem:[#allocation13] ss:$0 sm:$0xff]  ;;  %vm343_vm7 = vcmask 254976   ;;  %s1826_s0 = sld [smem:[#allocation43_spill]] }
  0x54   :  { %1033 = vrcp.f32 %v1461_v14  ;;  %v1021_v31 = vld [vmem:[#allocation8] ss:$0 sm:$0xff]  ;;  %s1827_s18 = sld [smem:[#allocation39_spill]]  ;;  %s1463_s28 = smov 128  }
  0x55   :  { %s1828_s4 = sld [smem:[#allocation45_spill]]  ;;  %s1464_s17 = smov 8  }
  0x56   :  { %455 = vmatpush.bf16.msra.mxu2 %v989_v6  ;;  %v997_v6 = vld [vmem:[%s1797_s20] sm:$0xff]  ;;  %s1829_s10 = sld [smem:[#allocation46_spill]] }
  0x57   :  { %v641_v0 = vld [vmem:[%s1824_s29] sm:$0xff]  ;;  %v642_v4 = vld [vmem:[%s1824_s29 + $0x8] sm:$0xff] }
  0x58   :  { %v985_v1 = vld [vmem:[%s1825_s6 + $0x10] sm:$0xff]  ;;  %v643_v3 = vsel %vm399_vm0, %v641_v0, 0.0  ;;  %v984_v5 = vld [vmem:[%s1825_s6 + $0x8] sm:$0xff]  ;;  %v646_v7 = vsel %vm399_vm0, %v642_v4, 0.0  ;;  %v983_v8 = vld [vmem:[%s1825_s6] sm:$0xff] }
  0x59   :  { %644 = vadd.xlane.f32.xlu0 %v643_v3  ;;  %315 = vmatpush.bf16.msra.mxu0 %v985_v1 }
  0x5a   :  { %456 = vmatpush.bf16.msra.mxu2 %v988_v10  ;;  %v1034_v15 = vpop.eup %1033 }
  0x5b   :  { %v348_v16 = vmul.f32 32.0, %v1034_v15  ;;  %vm352_vm2 = vweird.f32 %v1034_v15 }
  0x5c   :  { %s878_s12 = sshll.u32 %s1829_s10, 4  ;;  %s879_s12 = int_to_ptr.hbm [resolvable:$true] %s878_s12 }
  0x5d   :  { %316 = vmatpush.bf16.msra.mxu0 %v984_v5  ;;  %933 = vmatmul.msk.bf16.vlgmr.msra.gmra.mxu2 %vm306_vm1, %v417_v13  ;;  %v349_v17 = vsub.f32 1.0, %v348_v16  ;;  %v998_v5 = vld [vmem:[%s1797_s20 + $0x8] sm:$0xff] }
  0x5f   :  { %v350_v18 = vmul.f32 %v1034_v15, %v349_v17 }
  0x61   :  { %647 = vadd.xlane.f32.xlu0 %v646_v7  ;;  %317 = vmatpush.bf16.msra.mxu0 %v983_v8  ;;  %v351_v19 = vadd.f32 %v1034_v15, %v350_v18 }
  0x63   :  { %v1663_v20 = vsel %vm352_vm2, %v1034_v15, %v351_v19 }
  0x64   :  { %910 = vmatmul.msk.bf16.vlgmr.msra.gmra.mxu0 %vm306_vm1, %v277_v12 }
  0x65   :  { %723 = vmatpush.bf16.msrb.mxu0 %v998_v5 }
  0x69   :  { %724 = vmatpush.bf16.msrb.mxu0 %v997_v6 }
  0xcc   :  { %v645_v21 = vpop.xlane.xlu0 %644 }
  0xcd   :  { %v649_v22 = vmul.f32 %v645_v21, %v1663_v20 }
  0xcf   :  { %v1666_v23 = vsub.f32 %v641_v0, %v649_v22 }
  0xd1   :  { %v653_v24 = vmul.f32 %v1666_v23, %v1666_v23 }
  0xd3   :  { %v655_v25 = vsel %vm399_vm0, %v653_v24, 0.0 }
  0xd4   :  { %656 = vadd.xlane.f32.xlu1 %v655_v25  ;;  %v648_v26 = vpop.xlane.xlu0 %647 }
  0xd5   :  { %v650_v27 = vmul.f32 %v648_v26, %v1663_v20 }
  0xd7   :  { %v1672_v28 = vsub.f32 %v642_v4, %v650_v27 }
  0xd9   :  { %v654_v29 = vmul.f32 %v1672_v28, %v1672_v28 }
  0xdb   :  { %v658_v30 = vsel %vm399_vm0, %v654_v29, 0.0 }
  0xdc   :  { %659 = vadd.xlane.f32.xlu1 %v658_v30  ;;  %v1023_v30 = vld [vmem:[#allocation22] ss:$0 sm:$0xff] }
  0xe0   :  { %v458_v36 = vpop.f32.mrf.mxu2 }
  0xe1   :  { %v319_v32 = vpop.f32.mrf.mxu0  ;;  %v459_v37 = vadd.f32 %v1022_v35, %v458_v36 }
  0xe2   :  { %v320_v33 = vadd.f32 %v1021_v31, %v319_v32 }
  0xe3   :  { %v934_v39 = vmul.f32 -1.442695, %v459_v37 }
  0xe4   :  { %v911_v34 = vmul.f32 -1.442695, %v320_v33 }
  0xe6   :  { %1035 = vpow2.f32 %v911_v34 }
  0xe7   :  { %1037 = vpow2.f32 %v934_v39 }
  0xe8   :  { %v460_v42 = vpop.f32.mrf.mxu2 }
  0xe9   :  { %v321_v38 = vpop.f32.mrf.mxu0 }
  0xec   :  { %v1036_v40 = vpop.eup %1035 }
  0xed   :  { %v326_v41 = vadd.f32 1.0, %v1036_v40  ;;  %v1038_v43 = vpop.eup %1037 }
  0xee   :  { %v465_v44 = vadd.f32 1.0, %v1038_v43 }
  0xef   :  { %1039 = vrcp.f32 %v326_v41  ;;  %v338_v47 = vand.u32 2147483648, %v326_v41  ;;  %vm332_vm3 = vweird.f32 %v326_v41  ;;  %v336_v49 = vand.u32 2147483647, %v326_v41 }
  0xf0   :  { %1041 = vrcp.f32 %v465_v44  ;;  %vm471_vm8 = vweird.f32 %v465_v44  ;;  %v477_v56 = vand.u32 2147483648, %v465_v44  ;;  %v475_v59 = vand.u32 2147483647, %v465_v44 }
  0xf1   :  { %v339_v51 = vor.u32 1.1754944e-38, %v338_v47  ;;  %vm337_vm6 = vcmp.eq.f32.partialorder %v336_v49, 8.507059e+37 }
  0xf2   :  { %v478_v63 = vor.u32 1.1754944e-38, %v477_v56  ;;  %vm476_vm11 = vcmp.eq.f32.partialorder %v475_v59, 8.507059e+37 }
  0xf5   :  { %v1040_v45 = vpop.eup %1039 }
  0xf6   :  { %v328_v46 = vmul.f32 %v1040_v45, %v326_v41  ;;  %vm333_vm4 = vweird.f32 %v1040_v45  ;;  %v1042_v52 = vpop.eup %1041 }
  0xf7   :  { %vm334_vm5 = vmor %vm332_vm3, %vm333_vm4  ;;  %v467_v54 = vmul.f32 %v1042_v52, %v465_v44  ;;  %vm472_vm9 = vweird.f32 %v1042_v52  ;;  %v1024_v44 = vld [vmem:[%s1798_s21] ss:$0 sm:$0xff] }
  0xf8   :  { %v329_v48 = vsub.f32 1.0, %v328_v46  ;;  %vm473_vm10 = vmor %vm471_vm8, %vm472_vm9 }
  0xf9   :  { %v468_v58 = vsub.f32 1.0, %v467_v54 }
  0xfa   :  { %v330_v50 = vmul.f32 %v1040_v45, %v329_v48  ;;  %v986_v48 = vld [vmem:[%s1826_s0] sm:$0xff] }
  0xfb   :  { %v469_v61 = vmul.f32 %v1042_v52, %v468_v58 }
  0xfc   :  { %v331_v53 = vadd.f32 %v1040_v45, %v330_v50  ;;  %v992_v50 = vld [vmem:[%s1790_s13 + $0x8] sm:$0xff] }
  0xfd   :  { %v470_v0 = vadd.f32 %v1042_v52, %v469_v61  ;;  %539 = vmatpush.bf16.msra.mxu3 %v992_v50  ;;  %v993_v61 = vld [vmem:[%s1792_s15] sm:$0xff] }
  0xfe   :  { %v335_v55 = vsel %vm334_vm5, %v1040_v45, %v331_v53  ;;  %v987_v45 = vld [vmem:[%s1826_s0 + $0x8] sm:$0xff] }
  0xff   :  { %v340_v57 = vsel %vm337_vm6, %v339_v51, %v335_v55  ;;  %v474_v1 = vsel %vm473_vm10, %v1042_v52, %v470_v0  ;;  %409 = vmatpush.bf16.msra.mxu1 %v987_v45  ;;  %v991_v51 = vld [vmem:[%s1790_s13] sm:$0xff] }
 0x100   :  { %v342_v60 = vmul.f32 %v340_v57, %v320_v33  ;;  %v479_v2 = vsel %vm476_vm11, %v478_v63, %v474_v1 }
 0x101   :  { %v481_v3 = vmul.f32 %v479_v2, %v459_v37  ;;  %540 = vmatpush.bf16.msra.mxu3 %v991_v51  ;;  %v546_v51 = vld [vmem:[#allocation5] sm:$0x3] }
 0x102   :  { %v344_v62 = vsel %vm343_vm7, %v342_v60, 0.0 }
 0x103   :  { %345 = vadd.xlane.f32.xlu2 %v344_v62  ;;  %v482_v4 = vsel %vm343_vm7, %v481_v3, 0.0  ;;  %410 = vmatpush.bf16.msra.mxu1 %v986_v48 }
 0x104   :  { %483 = vadd.xlane.f32.xlu0 %v482_v4 }
 0x147   :  { %v657_v7 = vpop.xlane.xlu1 %656 }
 0x148   :  { %v661_v8 = vmul.f32 %v657_v7, %v1663_v20 }
 0x14a   :  { %v663_v9 = vadd.f32 1e-05, %v661_v8 }
 0x14c   :  { %1043 = vrsqrt.f32 %v663_v9  ;;  %vm671_vm13 = vweird.f32 %v663_v9 }
 0x14f   :  { %v660_v10 = vpop.xlane.xlu1 %659 }
 0x150   :  { %v662_v11 = vmul.f32 %v660_v10, %v1663_v20 }
 0x152   :  { %v1044_v12 = vpop.eup %1043  ;;  %v664_v13 = vadd.f32 1e-05, %v662_v11 }
 0x153   :  { %v666_v14 = vmul.f32 %v1044_v12, %v663_v9  ;;  %vm672_vm12 = vweird.f32 %v1044_v12 }
 0x154   :  { %1045 = vrsqrt.f32 %v664_v13  ;;  %vm673_vm14 = vmor %vm671_vm13, %vm672_vm12  ;;  %vm681_vm1 = vweird.f32 %v664_v13 }
 0x155   :  { %v667_v15 = vmul.f32 %v1044_v12, %v666_v14 }
 0x157   :  { %v668_v16 = vmul.f32 0.5, %v667_v15 }
 0x159   :  { %v669_v17 = vsub.f32 1.5, %v668_v16 }
 0x15a   :  { %v1046_v18 = vpop.eup %1045 }
 0x15b   :  { %v676_v19 = vmul.f32 %v1046_v18, %v664_v13  ;;  %v670_v21 = vmul.f32 %v1044_v12, %v669_v17  ;;  %vm682_vm15 = vweird.f32 %v1046_v18 }
 0x15c   :  { %vm683_vm2 = vmor %vm681_vm1, %vm682_vm15 }
 0x15d   :  { %v677_v22 = vmul.f32 %v1046_v18, %v676_v19  ;;  %v674_v25 = vsel %vm673_vm14, %v1044_v12, %v670_v21 }
 0x15e   :  { %v685_v29 = vmul.f32 %v674_v25, %v1666_v23 }
 0x15f   :  { %v678_v24 = vmul.f32 0.5, %v677_v22 }
 0x160   :  { %v691_v33 = vmul.f32 %v1023_v30, %v685_v29  ;;  %v1025_v29 = vld [vmem:[#allocation10] ss:$0 sm:$0xff] }
 0x161   :  { %v679_v26 = vsub.f32 1.5, %v678_v24 }
 0x163   :  { %v680_v27 = vmul.f32 %v1046_v18, %v679_v26 }
 0x165   :  { %v684_v31 = vsel %vm683_vm2, %v1046_v18, %v680_v27  ;;  %vm861_vm2 = vcmask 253952  }
 0x166   :  { %v686_v32 = vmul.f32 %v684_v31, %v1672_v28 }
 0x168   :  { %v692_v34 = vmul.f32 %v1023_v30, %v686_v32 }
 0x16a   :  { %v693_v35 = vpack.c.bf16 %v692_v34, %v691_v33 }
 0x16c   :  { %971 = vmatmul.msk.bf16.vlgmr.msrb.gmra.mxu0 %vm399_vm0, %v693_v35 }
 0x176   :  { %v346_v36 = vpop.xlane.xlu2 %345 }
 0x177   :  { %v354_v37 = vmul.f32 %v1663_v20, %v346_v36  ;;  %v484_v40 = vpop.xlane.xlu0 %483 }
 0x178   :  { %v485_v41 = vmul.f32 %v484_v40, %v1663_v20 }
 0x179   :  { %v1691_v38 = vsub.f32 %v342_v60, %v354_v37  ;;  %v994_v60 = vld [vmem:[%s1792_s15 + $0x8] sm:$0xff] }
 0x17a   :  { %v1697_v28 = vsub.f32 %v481_v3, %v485_v41  ;;  %577 = vmatpush.bf16.msrb.mxu1 %v994_v60 }
 0x17b   :  { %v356_v39 = vmul.f32 %v1691_v38, %v1691_v38 }
 0x17c   :  { %v487_v42 = vmul.f32 %v1697_v28, %v1697_v28 }
 0x17d   :  { %v357_v23 = vsel %vm343_vm7, %v356_v39, 0.0 }
 0x17e   :  { %358 = vadd.xlane.f32.xlu2 %v357_v23  ;;  %v488_v43 = vsel %vm343_vm7, %v487_v42, 0.0  ;;  %578 = vmatpush.bf16.msrb.mxu1 %v993_v61  ;;  %v1026_v42 = vld [vmem:[#allocation14] ss:$0 sm:$0xff]  ;;  %v1027_v61 = vld [vmem:[#allocation11] ss:$0 sm:$0xff] }
 0x17f   :  { %489 = vadd.xlane.f32.xlu0 %v488_v43 }
 0x1e9   :  { %v726_v46 = vpop.f32.mrf.mxu0 }
 0x1ea   :  { %v727_v47 = vadd.f32 %v1024_v44, %v726_v46 }
 0x1ec   :  { %v972_v49 = vmul.f32 -1.442695, %v727_v47 }
 0x1ee   :  { %1047 = vpow2.f32 %v972_v49 }
 0x1f1   :  { %v728_v52 = vpop.f32.mrf.mxu0  ;;  %v359_v53 = vpop.xlane.xlu2 %358 }
 0x1f2   :  { %v1717_v54 = vadd.f32 %v1024_v44, %v728_v52  ;;  %v360_v55 = vmul.f32 %v359_v53, %v1663_v20  ;;  %v490_v62 = vpop.xlane.xlu0 %489  ;;  %v547_v52 = vpack.c.bf16 %v546_v51, %v546_v51  ;;  %v859_v53 = vld [vmem:[%s1827_s18] sm:$0x1] }
 0x1f3   :  { %v491_v63 = vmul.f32 %v490_v62, %v1663_v20  ;;  %865 = vst.msk [vmem:[#allocation25 + $0xb] sm:$0x1] %vm861_vm2, %v859_v53  ;;  %v1030_v51 = vld [vmem:[%s1799_s22] ss:$0 sm:$0xff]  ;;  %s1462_s22 = smov [#allocation25]  }
 0x1f4   :  { %v1048_v56 = vpop.eup %1047  ;;  %v973_v57 = vmul.f32 -1.442695, %v1717_v54  ;;  %v361_v58 = vadd.f32 1e-05, %v360_v55  ;;  %871 = vst.msk [vmem:[#allocation25 + $0x17] sm:$0x1] %vm861_vm2, %v859_v53 }
 0x1f5   :  { %v737_v59 = vadd.f32 1.0, %v1048_v56  ;;  %v492_v0 = vadd.f32 1e-05, %v491_v63  ;;  %s876_s27 = sshll.u32 %s1462_s22, 4  ;;  %s877_s27 = int_to_ptr.vmem [resolvable:$true] %s876_s27 }
 0x1f6   :  { %1049 = vpow2.f32 %v973_v57  ;;  %vm368_vm8 = vweird.f32 %v361_v58 }
 0x1f7   :  { %1051 = vrcp.f32 %v737_v59  ;;  %v750_v9 = vand.u32 2147483648, %v737_v59  ;;  %v748_v11 = vand.u32 2147483647, %v737_v59  ;;  %vm744_vm4 = vweird.f32 %v737_v59 }
 0x1f8   :  { %1053 = vrsqrt.f32 %v361_v58  ;;  %vm499_vm9 = vweird.f32 %v492_v0 }
 0x1f9   :  { %1055 = vrsqrt.f32 %v492_v0  ;;  %v751_v18 = vor.u32 1.1754944e-38, %v750_v9  ;;  %vm749_vm7 = vcmp.eq.f32.partialorder %v748_v11, 8.507059e+37  ;;  %v1029_v9 = vld [vmem:[#allocation17] ss:$0 sm:$0xff] }
 0x1fc   :  { %v1050_v1 = vpop.eup %1049 }
 0x1fd   :  { %v1052_v2 = vpop.eup %1051  ;;  %v738_v3 = vadd.f32 1.0, %v1050_v1 }
 0x1fe   :  { %v1054_v4 = vpop.eup %1053  ;;  %v740_v5 = vmul.f32 %v1052_v2, %v737_v59  ;;  %vm745_vm3 = vweird.f32 %v1052_v2 }
 0x1ff   :  { %1057 = vrcp.f32 %v738_v3  ;;  %v363_v6 = vmul.f32 %v1054_v4, %v361_v58  ;;  %v1056_v12 = vpop.eup %1055  ;;  %vm369_vm5 = vweird.f32 %v1054_v4  ;;  %vm746_vm6 = vmor %vm744_vm4, %vm745_vm3  ;;  %v763_v32 = vand.u32 2147483647, %v738_v3 }
 0x200   :  { %v741_v7 = vsub.f32 1.0, %v740_v5  ;;  %v494_v14 = vmul.f32 %v1056_v12, %v492_v0  ;;  %vm370_vm10 = vmor %vm368_vm8, %vm369_vm5  ;;  %vm500_vm11 = vweird.f32 %v1056_v12  ;;  %v765_v33 = vand.u32 2147483648, %v738_v3 }
 0x201   :  { %v364_v8 = vmul.f32 %v1054_v4, %v363_v6  ;;  %vm501_vm13 = vmor %vm499_vm9, %vm500_vm11  ;;  %vm759_vm14 = vweird.f32 %v738_v3  ;;  %vm764_vm1 = vcmp.eq.f32.partialorder %v763_v32, 8.507059e+37  ;;  %vm867_vm3 = vcmask 254977  }
 0x202   :  { %v742_v10 = vmul.f32 %v1052_v2, %v741_v7  ;;  %v495_v19 = vmul.f32 %v1056_v12, %v494_v14  ;;  %v766_v41 = vor.u32 1.1754944e-38, %v765_v33  ;;  %v996_v7 = vld [vmem:[#allocation19 + $0x8] sm:$0xff] }
 0x203   :  { %v365_v13 = vmul.f32 0.5, %v364_v8  ;;  %634 = vmatpush.bf16.msrb.mxu3 %v996_v7 }
 0x204   :  { %v743_v15 = vadd.f32 %v1052_v2, %v742_v10  ;;  %v496_v26 = vmul.f32 0.5, %v495_v19 }
 0x205   :  { %v1058_v16 = vpop.eup %1057  ;;  %v366_v17 = vsub.f32 1.5, %v365_v13 }
 0x206   :  { %v747_v21 = vsel %vm746_vm6, %v1052_v2, %v743_v15  ;;  %v755_v22 = vmul.f32 %v1058_v16, %v738_v3  ;;  %vm760_vm12 = vweird.f32 %v1058_v16  ;;  %v497_v34 = vsub.f32 1.5, %v496_v26  ;;  %v1028_v3 = vld [vmem:[#allocation16] ss:$0 sm:$0xff] }
 0x207   :  { %v367_v24 = vmul.f32 %v1054_v4, %v366_v17  ;;  %v752_v25 = vsel %vm749_vm7, %v751_v18, %v747_v21  ;;  %vm761_vm15 = vmor %vm759_vm14, %vm760_vm12 }
 0x208   :  { %v769_v27 = vmul.f32 %v752_v25, %v727_v47  ;;  %v756_v30 = vsub.f32 1.0, %v755_v22  ;;  %v498_v39 = vmul.f32 %v1056_v12, %v497_v34  ;;  %v999_v34 = vld [vmem:[#allocation23] sm:$0xff] }
 0x209   :  { %v371_v31 = vsel %vm370_vm10, %v1054_v4, %v367_v24 }
 0x20a   :  { %v771_v35 = vsel %vm399_vm0, %v769_v27, 0.0  ;;  %v372_v36 = vmul.f32 %v371_v31, %v1691_v38  ;;  %v757_v37 = vmul.f32 %v1058_v16, %v756_v30  ;;  %v502_v45 = vsel %vm501_vm13, %v1056_v12, %v498_v39  ;;  %v1000_v31 = vld [vmem:[#allocation23 + $0x8] sm:$0xff] }
 0x20b   :  { %772 = vadd.xlane.f32.xlu1 %v771_v35  ;;  %v503_v47 = vmul.f32 %v502_v45, %v1697_v28  ;;  %851 = vmatpush.bf16.msrb.mxu2 %v1000_v31 }
 0x20c   :  { %v377_v40 = vmul.f32 %v1025_v29, %v372_v36  ;;  %v758_v23 = vadd.f32 %v1058_v16, %v757_v37  ;;  %v995_v29 = vld [vmem:[#allocation19] sm:$0xff] }
 0x20d   :  { %v508_v48 = vmul.f32 %v1026_v42, %v503_v47  ;;  %635 = vmatpush.bf16.msrb.mxu3 %v995_v29 }
 0x20e   :  { %v378_v43 = vpack.c.bf16 %v377_v40, %v377_v40  ;;  %v762_v44 = vsel %vm761_vm15, %v1058_v16, %v758_v23 }
 0x20f   :  { %v767_v46 = vsel %vm764_vm1, %v766_v41, %v762_v44  ;;  %v509_v50 = vpack.c.bf16 %v508_v48, %v508_v48  ;;  %852 = vmatpush.bf16.msrb.mxu2 %v999_v34 }
 0x210   :  { %920 = vmatmul.msk.bf16.vlgmr.msra.gmra.mxu1 %vm399_vm0, %v378_v43  ;;  %v770_v38 = vmul.f32 %v767_v46, %v1717_v54 }
 0x211   :  { %943 = vmatmul.msk.bf16.vlgmr.msra.gmra.mxu3 %vm399_vm0, %v509_v50 }
 0x212   :  { %v774_v49 = vsel %vm399_vm0, %v770_v38, 0.0 }
 0x213   :  { %775 = vadd.xlane.f32.xlu2 %v774_v49 }
 0x220   :  { %952 = vmatmul.msk.bf16.vlgmr.msrb.gmra.mxu1 %vm399_vm0, %v547_v52 }
 0x27e   :  { %v773_v28 = vpop.xlane.xlu1 %772 }
 0x27f   :  { %v777_v54 = vmul.f32 %v773_v28, %v1663_v20 }
 0x281   :  { %v1743_v55 = vsub.f32 %v769_v27, %v777_v54 }
 0x283   :  { %v781_v56 = vmul.f32 %v1743_v55, %v1743_v55 }
 0x285   :  { %v783_v57 = vsel %vm399_vm0, %v781_v56, 0.0 }
 0x286   :  { %784 = vadd.xlane.f32.xlu1 %v783_v57  ;;  %v776_v58 = vpop.xlane.xlu2 %775  ;;  %v1031_v57 = vld [vmem:[#allocation20] ss:$0 sm:$0xff] }
 0x287   :  { %v778_v59 = vmul.f32 %v776_v58, %v1663_v20 }
 0x289   :  { %v1749_v60 = vsub.f32 %v770_v38, %v778_v59 }
 0x28b   :  { %v782_v62 = vmul.f32 %v1749_v60, %v1749_v60 }
 0x28d   :  { %v412_v63 = vpop.f32.mrf.mxu1  ;;  %v786_v0 = vsel %vm399_vm0, %v782_v62, 0.0 }
 0x28e   :  { %v413_v1 = vadd.f32 %v1027_v61, %v412_v63  ;;  %787 = vadd.xlane.f32.xlu2 %v786_v0  ;;  %v1032_v61 = vld [vmem:[%s1828_s4] ss:$0 sm:$0xff] }
 0x290   :  { %864 = vst.msk [vmem:[#allocation25 + $0xa] sm:$0x1] %vm861_vm2, %v413_v1 }
 0x291   :  { %870 = vst.msk [vmem:[#allocation25 + $0x15] sm:$0x2] %vm867_vm3, %v413_v1 }
 0x294   :  { %v542_v4 = vpop.f32.mrf.mxu3 }
 0x295   :  { %v414_v2 = vpop.f32.mrf.mxu1  ;;  %v543_v5 = vadd.f32 %v1028_v3, %v542_v4 }
 0x297   :  { %862 = vst.msk [vmem:[#allocation25 + $0x8] sm:$0x1] %vm861_vm2, %v543_v5 }
 0x298   :  { %868 = vst.msk [vmem:[#allocation25 + $0x13] sm:$0x2] %vm867_vm3, %v543_v5 }
 0x29c   :  { %v544_v8 = vpop.f32.mrf.mxu3 }
 0x29d   :  { %v580_v6 = vpop.f32.mrf.mxu1 }
 0x29e   :  { %v581_v10 = vadd.f32 %v1029_v9, %v580_v6 }
 0x2a0   :  { %v953_v12 = vmul.f32 -1.442695, %v581_v10 }
 0x2a2   :  { %1059 = vpow2.f32 %v953_v12 }
 0x2a5   :  { %v582_v11 = vpop.f32.mrf.mxu1 }
 0x2a8   :  { %v1060_v13 = vpop.eup %1059 }
 0x2a9   :  { %v587_v14 = vadd.f32 1.0, %v1060_v13 }
 0x2ab   :  { %1061 = vrcp.f32 %v587_v14  ;;  %vm593_vm4 = vweird.f32 %v587_v14  ;;  %v599_v19 = vand.u32 2147483648, %v587_v14  ;;  %v597_v22 = vand.u32 2147483647, %v587_v14 }
 0x2ad   :  { %v600_v24 = vor.u32 1.1754944e-38, %v599_v19  ;;  %vm598_vm7 = vcmp.eq.f32.partialorder %v597_v22, 8.507059e+37 }
 0x2b1   :  { %v1062_v15 = vpop.eup %1061 }
 0x2b2   :  { %v589_v16 = vmul.f32 %v1062_v15, %v587_v14  ;;  %vm594_vm5 = vweird.f32 %v1062_v15 }
 0x2b3   :  { %vm595_vm6 = vmor %vm593_vm4, %vm594_vm5 }
 0x2b4   :  { %v590_v17 = vsub.f32 1.0, %v589_v16 }
 0x2b6   :  { %v591_v18 = vmul.f32 %v1062_v15, %v590_v17 }
 0x2b8   :  { %v592_v21 = vadd.f32 %v1062_v15, %v591_v18 }
 0x2ba   :  { %v596_v25 = vsel %vm595_vm6, %v1062_v15, %v592_v21 }
 0x2bb   :  { %v601_v26 = vsel %vm598_vm7, %v600_v24, %v596_v25 }
 0x2bc   :  { %v603_v27 = vmul.f32 %v601_v26, %v581_v10 }
 0x2be   :  { %v604_v30 = vpack.c.bf16 %v603_v27, %v603_v27 }
 0x2c0   :  { %962 = vmatmul.msk.bf16.vlgmr.msrb.gmra.mxu3 %vm399_vm0, %v604_v30 }
 0x2f9   :  { %v785_v32 = vpop.xlane.xlu1 %784 }
 0x2fa   :  { %v789_v33 = vmul.f32 %v785_v32, %v1663_v20 }
 0x2fc   :  { %v791_v35 = vadd.f32 1e-05, %v789_v33 }
 0x2fe   :  { %1063 = vrsqrt.f32 %v791_v35  ;;  %vm799_vm9 = vweird.f32 %v791_v35 }
 0x301   :  { %v788_v36 = vpop.xlane.xlu2 %787 }
 0x302   :  { %v790_v37 = vmul.f32 %v788_v36, %v1663_v20 }
 0x304   :  { %v1064_v39 = vpop.eup %1063  ;;  %v792_v40 = vadd.f32 1e-05, %v790_v37 }
 0x305   :  { %v794_v23 = vmul.f32 %v1064_v39, %v791_v35  ;;  %vm800_vm8 = vweird.f32 %v1064_v39 }
 0x306   :  { %1065 = vrsqrt.f32 %v792_v40  ;;  %vm801_vm10 = vmor %vm799_vm9, %vm800_vm8  ;;  %vm809_vm12 = vweird.f32 %v792_v40 }
 0x307   :  { %v795_v41 = vmul.f32 %v1064_v39, %v794_v23 }
 0x309   :  { %v796_v42 = vmul.f32 0.5, %v795_v41 }
 0x30b   :  { %v797_v43 = vsub.f32 1.5, %v796_v42 }
 0x30c   :  { %v1066_v44 = vpop.eup %1065 }
 0x30d   :  { %v804_v45 = vmul.f32 %v1066_v44, %v792_v40  ;;  %v798_v46 = vmul.f32 %v1064_v39, %v797_v43  ;;  %vm810_vm11 = vweird.f32 %v1066_v44 }
 0x30e   :  { %vm811_vm13 = vmor %vm809_vm12, %vm810_vm11 }
 0x30f   :  { %v805_v47 = vmul.f32 %v1066_v44, %v804_v45  ;;  %v802_v48 = vsel %vm801_vm10, %v1064_v39, %v798_v46 }
 0x310   :  { %v813_v20 = vmul.f32 %v802_v48, %v1743_v55 }
 0x311   :  { %v806_v38 = vmul.f32 0.5, %v805_v47 }
 0x312   :  { %v819_v28 = vmul.f32 %v1030_v51, %v813_v20 }
 0x313   :  { %v807_v49 = vsub.f32 1.5, %v806_v38 }
 0x315   :  { %v808_v50 = vmul.f32 %v1066_v44, %v807_v49 }
 0x317   :  { %v812_v52 = vsel %vm811_vm13, %v1066_v44, %v808_v50 }
 0x318   :  { %v814_v53 = vmul.f32 %v812_v52, %v1749_v60 }
 0x31a   :  { %v820_v54 = vmul.f32 %v1030_v51, %v814_v53 }
 0x31c   :  { %v821_v56 = vpack.c.bf16 %v820_v54, %v819_v28 }
 0x31e   :  { %982 = vmatmul.msk.bf16.vlgmr.msrb.gmra.mxu2 %vm399_vm0, %v821_v56 }
 0x343   :  { %v637_v58 = vpop.f32.mrf.mxu3 }
 0x344   :  { %v638_v59 = vadd.f32 %v1031_v57, %v637_v58 }
 0x346   :  { %863 = vst.msk [vmem:[#allocation25 + $0x9] sm:$0x1] %vm861_vm2, %v638_v59 }
 0x347   :  { %869 = vst.msk [vmem:[#allocation25 + $0x14] sm:$0x2] %vm867_vm3, %v638_v59 }
 0x34b   :  { %v639_v55 = vpop.f32.mrf.mxu3 }
 0x3a1   :  { %v854_v62 = vpop.f32.mrf.mxu2 }
 0x3a2   :  { %v855_v63 = vadd.f32 %v1032_v61, %v854_v62 }
 0x3a4   :  { %860 = vst.msk [vmem:[#allocation25] sm:$0xff] %vm399_vm0, %v855_v63 }
 0x3a9   :  { %v856_v60 = vpop.f32.mrf.mxu2 }
 0x3aa   :  { %v857_v0 = vadd.f32 %v1032_v61, %v856_v60 }
 0x3ac   :  { %866 = vst.msk [vmem:[#allocation25 + $0xc] sm:$0xff] %vm399_vm0, %v857_v0 }
 0x3ad   :  { %884 = dma.vmem_to_hbm [thread:$0]  %s877_s27, 384, %s879_s12, [#allocation4], %s1463_s28, %s1463_s28, %s1464_s17  }
 0x3ae   :  { %1443 = dma.done.wait [#allocation4], 384  }
 0x3af   :  { %1444 = vsyncadd [#allocation4], 4294966912 }
 0x3b0   :  { %889 = vsyncpa [#allocation3], 1 }
 0x3b1   :  { %890 = vsyncpa [#allocation6], 1 }
 0x3b2   :  { %891 = vsyncpa [#allocation9], 1 }
 0x3b3   :  { %892 = vsyncpa [#allocation12], 1 }
 0x3b4   :  { %893 = vsyncpa [#allocation15], 1 }
 0x3b5   :  { %894 = vsyncpa [#allocation18], 1 }
 0x3b6   :  { %895 = vsyncpa [#allocation21], 1 }
 0x3b7   :  { %896 = vsyncpa [#allocation24], 1 }
 0x3b8   :  { %897 = vsyncpa [#allocation4], 1 }

</bundles_post_ra>
